<compile_context>
chip_gen: v7x
topology: tpu7x:2x2x1
jax: 0.10.0
libtpu: 0.0.40
codegen_flags: <defaults>
</compile_context>

<pallas_src>
import jax
import jax.numpy as jnp
from jax.experimental import pallas as pl
from jax.experimental.pallas import tpu as pltpu

# ----------------------------- config (cfg) ---------------------------------
BATCH = 2
IMG_C = 3
IMG_H = IMG_W = 16
PATCH = 4                       # synthetic "ViT" patch size
FEAT_DIM = 32                   # model.feat_dim
NCODES = 16                     # VQ codebook size
NUM_CLASSES = 4                 # cfg['num_classes']
EXTRA_CLASSES = 1               # cfg['eval']['extra_classes']
N_CLUSTERS = NUM_CLASSES + EXTRA_CLASSES

RECON_WEIGHT = 1.0              # cfg['loss']['recon_weight']
VQ_WEIGHT = 1.0                 # cfg['loss']['vq_weight']
INFO_NCE_WEIGHT = 0.0           # cfg['loss']['info_nce_weight']
JSD_WEIGHT = 0.0                # cfg['loss']['jsd_weight']
MARGIN_WEIGHT = 0.0             # cfg['loss']['margin_weight']
OUTPUT_TYPE = "feat"            # cfg['eval']['output_type'] -> output_dim = feat_dim
USE_KMEANS_SAMPLING = False     # cfg['model']['vq']['use_kmeans_sampling']

_PP = PATCH * PATCH             # pixels per patch
_PDIM = IMG_C * _PP             # flattened patch dimension
_LANES = 128                    # lane-dense output width / fused RHS width
_C_OFF = 0                      # fused-RHS lane offsets: codebook^T
_L_OFF = NCODES                 #                         w_lin
_K_OFF = NCODES + NUM_CLASSES   #                         normalized clusters^T
assert NCODES + NUM_CLASSES + N_CLUSTERS <= _LANES


# ------------------------------- fused kernel --------------------------------
def _argmax_lane(x):
    """Argmax along the last (lane) dim, lowest index on ties.
    Returns ((rows, 1) int32 index, (rows, 1) f32 max value)."""
    k = x.shape[-1]
    mx = jnp.max(x, axis=-1, keepdims=True)
    ids = jax.lax.broadcasted_iota(jnp.int32, x.shape, 1)
    idx = jnp.min(jnp.where(x == mx, ids, k), axis=-1, keepdims=True)
    return idx, mx


def fused_forward_kernel(
    patches_ref,    # (BM, PDIM) bf16   flattened image patches (one M block)
    lab_ref,        # (BM, PP)   int32  per-patch pixel labels
    w_embed_ref,    # (PDIM, D)  bf16
    b_embed_ref,    # (1, D)     f32
    rhs_ref,        # (D, 128)   bf16   [codebook^T | w_lin | clusters_norm^T | 0-pad]
    dec_cb_ref,     # (N, PDIM)  bf16   decoded codebook = codebook @ w_dec + b_dec
    aux_ref,        # (8, 128)   f32    row0 ||e_n||^2, row1 ||dec_n||^2, row2 b_lin
    preds_ref,      # (BM, 128)  int32  lane0 = linear argmax, lane1 = cluster argmax
    losses_ref,     # (8, 128)   f32    row0 lanes 0..3 = vq, recon, ce, -cluster sums
):
    patches = patches_ref[...]                            # bf16 (BM, PDIM)
    lab = lab_ref[...]                                     # int32 (BM, PP)
    aux = aux_ref[...]                                     # f32  (8, 128)
    bm = lab.shape[0]
    pp = lab.shape[1]

    # ---- synthetic DINOUnSeg backbone: patch embedding (bf16 MXU, f32 acc) ---
    feat = (jnp.dot(patches, w_embed_ref[...], preferred_element_type=jnp.float32)
            + b_embed_ref[...])                            # f32 (BM, D)
    f2 = jnp.sum(feat * feat, axis=-1, keepdims=True)      # (BM, 1)

    # ---- ONE fused shared-LHS matmul: feat @ [cb^T | w_lin | clusters^T] -----
    fz = jnp.dot(feat.astype(jnp.bfloat16), rhs_ref[...],
                 preferred_element_type=jnp.float32)       # f32 (BM, 128)
    cross = fz[:, _C_OFF:_C_OFF + NCODES]                  # (BM, N)  feat . e_n
    logits = fz[:, _L_OFF:_L_OFF + NUM_CLASSES] + aux[2:3, 0:NUM_CLASSES]   # (BM, K)
    raw_cl = fz[:, _K_OFF:_K_OFF + N_CLUSTERS]             # (BM, NC) feat . cluster_n

    # ---- VQ: nearest code, argmin_n (||e_n||^2 - 2 f.e_n) --------------------
    d2 = aux[0:1, 0:NCODES] - 2.0 * cross                  # (BM, N) (row-const ||f||^2 dropped)
    dmin = jnp.min(d2, axis=-1, keepdims=True)             # (BM, 1)
    nids = jax.lax.broadcasted_iota(jnp.int32, d2.shape, 1)
    nidx = jnp.min(jnp.where(d2 == dmin, nids, NCODES), axis=-1, keepdims=True)
    onehot = (nids == nidx).astype(jnp.float32)            # (BM, N)
    vq_sum = jnp.sum(f2 + dmin, axis=0, keepdims=True)     # (1,1)  sum ||feat - q||^2
    # TODO(synk): exact VQ loss (codebook + commitment with stop-gradients) of the
    # original model is approximated by a plain MSE between feat and quantized.

    # ---- decoder recon loss without the (BM, PDIM) intermediate --------------
    # ||dec_n* - x||^2 = ||dec_n*||^2 - 2 x.dec_n* + ||x||^2
    p32 = patches.astype(jnp.float32)
    p2 = jnp.sum(p32 * p32, axis=-1, keepdims=True)        # (BM, 1)
    cross2 = jax.lax.dot_general(patches, dec_cb_ref[...], (((1,), (1,)), ((), ())),
                                 preferred_element_type=jnp.float32)    # (BM, N)
    recon_row = (jnp.sum(onehot * (aux[1:2, 0:NCODES] - 2.0 * cross2),
                         axis=-1, keepdims=True) + p2)     # (BM, 1)
    recon_sum = jnp.sum(recon_row, axis=0, keepdims=True)  # (1, 1)

    # ---- UnSegEvaluator: linear probe, per-patch cross-entropy + argmax ------
    lin_idx, mx_l = _argmax_lane(logits)
    lse = jnp.log(jnp.sum(jnp.exp(logits - mx_l), axis=-1, keepdims=True)) + mx_l
    # vectorized per-patch label histogram: one compare vs class iota + one reduce
    cls = jax.lax.broadcasted_iota(jnp.int32, (bm, NUM_CLASSES, pp), 1)
    counts = jnp.sum((lab[:, None, :] == cls).astype(jnp.float32), axis=2)  # (BM, K)
    true_row = jnp.sum(counts * logits, axis=-1, keepdims=True)             # (BM, 1)
    ce_sum = (float(pp) * jnp.sum(lse, axis=0, keepdims=True)
              - jnp.sum(true_row, axis=0, keepdims=True))                   # (1, 1)
    # TODO(synk): no ignore-index handling; labels are assumed in [0, K).

    # ---- UnSegEvaluator: cosine cluster probe (clusters pre-normalized) ------
    inner = raw_cl * jax.lax.rsqrt(f2 + 1e-12)             # cosine similarity
    cl_idx, mx_c = _argmax_lane(inner)
    cl_neg_sum = -jnp.sum(mx_c, axis=0, keepdims=True)     # (1, 1)

    # ---- lane-dense outputs ----------------------------------------------------
    lane = jax.lax.broadcasted_iota(jnp.int32, (bm, _LANES), 1)
    preds_ref[...] = (jnp.where(lane == 0, lin_idx, 0)
                      + jnp.where(lane == 1, cl_idx, 0))

    lrow = jax.lax.broadcasted_iota(jnp.int32, (8, _LANES), 0)
    llane = jax.lax.broadcasted_iota(jnp.int32, (8, _LANES), 1)
    vals = (jnp.where(llane == 0, vq_sum, 0.0)
            + jnp.where(llane == 1, recon_sum, 0.0)
            + jnp.where(llane == 2, ce_sum, 0.0)
            + jnp.where(llane == 3, cl_neg_sum, 0.0))
    losses_ref[...] = jnp.where(lrow == 0, vals, 0.0)


def _pick_block_m(m, target=512):
    """Largest multiple-of-8 divisor of m <= target, preferring >=2 grid steps."""
    if m % 8 != 0:
        return m                                   # single full-array block fallback
    cap = min(m // 2 if m > 8 else m, target)      # >=2 steps so v7x's 2 TCs both work
    best = 8 if cap >= 8 else m
    c = 8
    while c <= cap:
        if m % c == 0:
            best = c
        c += 8
    return best


def fused_forward(patches, labels_patch, w_embed, b_embed, fused_rhs, dec_cb, aux):
    m, pdim = patches.shape
    pp = labels_patch.shape[1]
    d = w_embed.shape[1]
    n = dec_cb.shape[0]
    block_m = _pick_block_m(m)
    nb = m // block_m

    return pl.pallas_call(
        fused_forward_kernel,
        out_shape=(jax.ShapeDtypeStruct((m, _LANES), jnp.int32),
                   jax.ShapeDtypeStruct((nb * 8, _LANES), jnp.float32)),
        grid=(nb,),
        in_specs=[
            pl.BlockSpec((block_m, pdim), lambda i: (i, 0)),   # patches (M-blocked)
            pl.BlockSpec((block_m, pp), lambda i: (i, 0)),     # labels  (M-blocked)
            pl.BlockSpec((pdim, d), lambda i: (0, 0)),         # w_embed (resident)
            pl.BlockSpec((1, d), lambda i: (0, 0)),            # b_embed
            pl.BlockSpec((d, _LANES), lambda i: (0, 0)),       # fused RHS
            pl.BlockSpec((n, pdim), lambda i: (0, 0)),         # decoded codebook
            pl.BlockSpec((8, _LANES), lambda i: (0, 0)),       # aux norms / bias row
        ],
        out_specs=(
            pl.BlockSpec((block_m, _LANES), lambda i: (i, 0)), # preds (lane-dense)
            pl.BlockSpec((8, _LANES), lambda i: (i, 0)),       # per-block loss sums
        ),
        compiler_params=pltpu.CompilerParams(
            dimension_semantics=("parallel",),
            vmem_limit_bytes=32 * 1024 * 1024),
    )(patches, labels_patch, w_embed, b_embed, fused_rhs, dec_cb, aux)


# ------------------------------ parameters -----------------------------------
def init_params(key):
    ks = jax.random.split(key, 6)
    pdim = IMG_C * PATCH * PATCH
    return {
        "w_embed": 0.05 * jax.random.normal(ks[0], (pdim, FEAT_DIM), jnp.float32),
        "b_embed": jnp.zeros((1, FEAT_DIM), jnp.float32),
        "codebook": 0.5 * jax.random.normal(ks[1], (NCODES, FEAT_DIM), jnp.float32),
        "w_dec": 0.05 * jax.random.normal(ks[2], (FEAT_DIM, pdim), jnp.float32),
        "b_dec": jnp.zeros((1, pdim), jnp.float32),
        "w_lin": 0.05 * jax.random.normal(ks[3], (FEAT_DIM, NUM_CLASSES), jnp.float32),
        "b_lin": jnp.zeros((1, NUM_CLASSES), jnp.float32),
        "clusters": jax.random.normal(ks[4], (N_CLUSTERS, FEAT_DIM), jnp.float32),
    }


# ------------------------------ forward pass ----------------------------------
def dino_new_vq_wrapper_forward(params, img, aug_img, label, it, is_crf=False):
    del aug_img, it, is_crf
    # TODO(synk): aug_img is only consumed by info_nce / jsd / margin branches,
    # whose weights are 0.0 in this config (branches skipped, as in the wrapper).
    # TODO(synk): is_crf=True CRF post-processing has no Pallas equivalent.
    b, c, hh, ww = img.shape
    p = PATCH
    h, w = hh // p, ww // p
    m = b * h * w
    pdim = c * p * p

    # ---- XLA glue: NCHW image / labels -> per-patch channel-last (bf16 operands) ----
    patches = (img.reshape(b, c, h, p, w, p)
               .transpose(0, 2, 4, 1, 3, 5)
               .reshape(m, pdim)).astype(jnp.bfloat16)
    labels_patch = (label.astype(jnp.int32)
                    .reshape(b, h, p, w, p)
                    .transpose(0, 1, 3, 2, 4)
                    .reshape(m, p * p))

    # ---- tiny parameter-only precompute (XLA, O(N*D*PDIM)): fused RHS + norms ----
    cb = params["codebook"]
    cl = params["clusters"]
    cn = cl * jax.lax.rsqrt(jnp.sum(cl * cl, axis=-1, keepdims=True) + 1e-12)
    rhs = jnp.zeros((FEAT_DIM, _LANES), jnp.float32)
    rhs = rhs.at[:, _C_OFF:_C_OFF + NCODES].set(cb.T)
    rhs = rhs.at[:, _L_OFF:_L_OFF + NUM_CLASSES].set(params["w_lin"])
    rhs = rhs.at[:, _K_OFF:_K_OFF + N_CLUSTERS].set(cn.T)
    fused_rhs = rhs.astype(jnp.bfloat16)

    dec_cb = jnp.dot(cb, params["w_dec"]) + params["b_dec"]          # (N, PDIM)
    aux = jnp.zeros((8, _LANES), jnp.float32)
    aux = aux.at[0, 0:NCODES].set(jnp.sum(cb * cb, axis=-1))         # ||e_n||^2
    aux = aux.at[1, 0:NCODES].set(jnp.sum(dec_cb * dec_cb, axis=-1)) # ||dec_n||^2
    aux = aux.at[2, 0:NUM_CLASSES].set(params["b_lin"][0])           # linear bias

    # ---- single fused Pallas kernel: embed -> VQ -> recon -> probes ----
    preds, losses = fused_forward(
        patches, labels_patch,
        params["w_embed"].astype(jnp.bfloat16), params["b_embed"],
        fused_rhs, dec_cb.astype(jnp.bfloat16), aux)

    loss_row = jnp.sum(losses, axis=0)                 # reduce per-block partial sums
    vq_loss_v = loss_row[0] / (m * FEAT_DIM)
    recon_loss_v = loss_row[1] / (m * pdim)
    linear_loss = loss_row[2] / (b * hh * ww)
    cluster_loss = loss_row[3] / m

    output = {"recon-loss": recon_loss_v, "vq-loss": vq_loss_v}

    model_loss = jnp.zeros((1,), jnp.float32)
    if RECON_WEIGHT > 0.0:
        model_loss = model_loss + output["recon-loss"] * RECON_WEIGHT
    if VQ_WEIGHT > 0.0:
        model_loss = model_loss + output["vq-loss"] * VQ_WEIGHT
    # info_nce / jsd / entropy / margin weights are 0.0 -> skipped (matches wrapper)
    output["loss"] = model_loss

    # output_type == 'feat' -> evaluator consumes feat.detach(); predictions are
    # constant within each patch, so upsample the per-patch argmax on the way out.
    # TODO(synk): original evaluator uses bilinear interpolation of logits to the
    # label size; nearest-neighbor (per-patch-constant) logits are used here.
    lin_patch = preds[:, 0].reshape(b, h, w)
    cl_patch = preds[:, 1].reshape(b, h, w)
    linear_preds = jnp.repeat(jnp.repeat(lin_patch, p, axis=1), p, axis=2)
    cluster_preds = jnp.repeat(jnp.repeat(cl_patch, p, axis=1), p, axis=2)

    output["linear-loss"] = linear_loss
    output["cluster-loss"] = cluster_loss

    total_loss = model_loss + linear_loss + cluster_loss               # shape (1,)
    return total_loss, output, (linear_preds, cluster_preds)


# --------------------------------- main ---------------------------------------
if __name__ == "__main__":
    key = jax.random.PRNGKey(0)
    k_img, k_aug, k_lab, k_par = jax.random.split(key, 4)

    img = jax.random.normal(k_img, (BATCH, IMG_C, IMG_H, IMG_W), jnp.float32)
    aug_img = jax.random.normal(k_aug, (BATCH, IMG_C, IMG_H, IMG_W), jnp.float32)
    label = jax.random.randint(k_lab, (BATCH, IMG_H, IMG_W), 0, NUM_CLASSES)
    params = init_params(k_par)

    fwd = jax.jit(dino_new_vq_wrapper_forward)
    total_loss, output, (linear_preds, cluster_preds) = fwd(
        params, img, aug_img, label, jnp.int32(0)
    )
    jax.block_until_ready(total_loss)

    assert total_loss.shape == (1,)
    assert linear_preds.shape == (BATCH, IMG_H, IMG_W)
    assert cluster_preds.shape == (BATCH, IMG_H, IMG_W)
    assert bool(jnp.isfinite(total_loss).all())
    assert bool((linear_preds >= 0).all() and (linear_preds < NUM_CLASSES).all())
    assert bool((cluster_preds >= 0).all() and (cluster_preds < N_CLUSTERS).all())

    print("KERNEL_OK")
</pallas_src>

<mosaic_0001>
module attributes {stable_mosaic.version = 11 : i64} {
  func.func @fused_forward_kernel(%arg0: i32, %arg1: memref<16x48xbf16, #tpu.memory_space<vmem>>, %arg2: memref<16x16xi32, #tpu.memory_space<vmem>>, %arg3: memref<48x32xbf16, #tpu.memory_space<vmem>>, %arg4: memref<1x32xf32, #tpu.memory_space<vmem>>, %arg5: memref<32x128xbf16, #tpu.memory_space<vmem>>, %arg6: memref<16x48xbf16, #tpu.memory_space<vmem>>, %arg7: memref<8x128xf32, #tpu.memory_space<vmem>>, %arg8: memref<16x128xi32, #tpu.memory_space<vmem>>, %arg9: memref<8x128xf32, #tpu.memory_space<vmem>>) attributes {dimension_semantics = [#tpu.dimension_semantics<parallel>], iteration_bounds = array<i64: 2>, scalar_prefetch = 0 : i64, scratch_operands = 0 : i64, tpu.core_type = #tpu.core_type<tc>, window_params = [{transform_indices = @transform_0, window_bounds = array<i64: 16, 48>}, {transform_indices = @transform_1, window_bounds = array<i64: 16, 16>}, {pipeline_mode = #tpu.pipeline_mode<synchronous>, transform_indices = @transform_2, window_bounds = array<i64: 48, 32>}, {pipeline_mode = #tpu.pipeline_mode<synchronous>, transform_indices = @transform_3, window_bounds = array<i64: 1, 32>}, {pipeline_mode = #tpu.pipeline_mode<synchronous>, transform_indices = @transform_4, window_bounds = array<i64: 32, 128>}, {pipeline_mode = #tpu.pipeline_mode<synchronous>, transform_indices = @transform_5, window_bounds = array<i64: 16, 48>}, {pipeline_mode = #tpu.pipeline_mode<synchronous>, transform_indices = @transform_6, window_bounds = array<i64: 8, 128>}, {transform_indices = @transform_7, window_bounds = array<i64: 16, 128>}, {transform_indices = @transform_8, window_bounds = array<i64: 8, 128>}]} {
    %c0 = arith.constant 0 : index
    %c0_0 = arith.constant 0 : index
    %0 = vector.load %arg1[%c0, %c0_0] : memref<16x48xbf16, #tpu.memory_space<vmem>>, vector<16x48xbf16>
    %c0_1 = arith.constant 0 : index
    %c0_2 = arith.constant 0 : index
    %1 = vector.load %arg2[%c0_1, %c0_2] : memref<16x16xi32, #tpu.memory_space<vmem>>, vector<16x16xi32>
    %c0_3 = arith.constant 0 : index
    %c0_4 = arith.constant 0 : index
    %2 = vector.load %arg7[%c0_3, %c0_4] : memref<8x128xf32, #tpu.memory_space<vmem>>, vector<8x128xf32>
    %c0_5 = arith.constant 0 : index
    %c0_6 = arith.constant 0 : index
    %3 = vector.load %arg3[%c0_5, %c0_6] : memref<48x32xbf16, #tpu.memory_space<vmem>>, vector<48x32xbf16>
    %cst = arith.constant dense<0.000000e+00> : vector<16x32xf32>
    %4 = tpu.matmul %0, %3, %cst {dimension_numbers = #tpu.dot_dimension_numbers<[1], [0], [0], [1], [0, 0, 1, 1], [], []>} : vector<16x48xbf16>, vector<48x32xbf16>, vector<16x32xf32> -> vector<16x32xf32>
    %c0_7 = arith.constant 0 : index
    %c0_8 = arith.constant 0 : index
    %5 = vector.load %arg4[%c0_7, %c0_8] : memref<1x32xf32, #tpu.memory_space<vmem>>, vector<1x32xf32>
    %6 = vector.broadcast %5 : vector<1x32xf32> to vector<16x32xf32>
    %7 = arith.addf %4, %6 : vector<16x32xf32>
    %8 = arith.mulf %7, %7 : vector<16x32xf32>
    %cst_9 = arith.constant dense<0.000000e+00> : vector<16xf32>
    %9 = vector.multi_reduction <add>, %8, %cst_9 [1] : vector<16x32xf32> to vector<16xf32>
    %10 = vector.shape_cast %9 : vector<16xf32> to vector<16x1xf32>
    %11 = arith.truncf %7 : vector<16x32xf32> to vector<16x32xbf16>
    %c0_10 = arith.constant 0 : index
    %c0_11 = arith.constant 0 : index
    %12 = vector.load %arg5[%c0_10, %c0_11] : memref<32x128xbf16, #tpu.memory_space<vmem>>, vector<32x128xbf16>
    %cst_12 = arith.constant dense<0.000000e+00> : vector<16x128xf32>
    %13 = tpu.matmul %11, %12, %cst_12 {dimension_numbers = #tpu.dot_dimension_numbers<[1], [0], [0], [1], [0, 0, 1, 1], [], []>} : vector<16x32xbf16>, vector<32x128xbf16>, vector<16x128xf32> -> vector<16x128xf32>
    %14 = vector.extract_strided_slice %13 {offsets = [0, 0], sizes = [16, 16], strides = [1, 1]} : vector<16x128xf32> to vector<16x16xf32>
    %15 = vector.extract_strided_slice %13 {offsets = [0, 16], sizes = [16, 4], strides = [1, 1]} : vector<16x128xf32> to vector<16x4xf32>
    %16 = vector.extract_strided_slice %2 {offsets = [2, 0], sizes = [1, 4], strides = [1, 1]} : vector<8x128xf32> to vector<1x4xf32>
    %17 = vector.broadcast %16 : vector<1x4xf32> to vector<16x4xf32>
    %18 = arith.addf %15, %17 : vector<16x4xf32>
    %19 = vector.extract_strided_slice %13 {offsets = [0, 20], sizes = [16, 5], strides = [1, 1]} : vector<16x128xf32> to vector<16x5xf32>
    %20 = vector.extract_strided_slice %2 {offsets = [0, 0], sizes = [1, 16], strides = [1, 1]} : vector<8x128xf32> to vector<1x16xf32>
    %cst_13 = arith.constant 2.000000e+00 : f32
    %21 = vector.broadcast %cst_13 : f32 to vector<16x16xf32>
    %22 = arith.mulf %21, %14 : vector<16x16xf32>
    %23 = vector.broadcast %20 : vector<1x16xf32> to vector<16x16xf32>
    %24 = arith.subf %23, %22 : vector<16x16xf32>
    %cst_14 = arith.constant dense<0x7F800000> : vector<16xf32>
    %25 = vector.multi_reduction <minimumf>, %24, %cst_14 [1] : vector<16x16xf32> to vector<16xf32>
    %26 = vector.shape_cast %25 : vector<16xf32> to vector<16x1xf32>
    %27 = tpu.iota {dimensions = array<i32: 1>} : vector<16x16xi32>
    %28 = vector.broadcast %26 : vector<16x1xf32> to vector<16x16xf32>
    %29 = arith.cmpf oeq, %24, %28 : vector<16x16xf32>
    %c16_i32 = arith.constant 16 : i32
    %30 = vector.broadcast %c16_i32 : i32 to vector<16x16xi32>
    %31 = arith.select %29, %27, %30 : vector<16x16xi1>, vector<16x16xi32>
    %cst_15 = arith.constant dense<2147483647> : vector<16xi32>
    %32 = vector.multi_reduction <minsi>, %31, %cst_15 [1] : vector<16x16xi32> to vector<16xi32>
    %33 = vector.shape_cast %32 : vector<16xi32> to vector<16x1xi32>
    %34 = vector.broadcast %33 : vector<16x1xi32> to vector<16x16xi32>
    %35 = arith.cmpi eq, %27, %34 : vector<16x16xi32>
    %36 = arith.extui %35 : vector<16x16xi1> to vector<16x16xi32>
    %37 = arith.sitofp %36 : vector<16x16xi32> to vector<16x16xf32>
    %38 = arith.addf %10, %26 : vector<16x1xf32>
    %cst_16 = arith.constant dense<0.000000e+00> : vector<1xf32>
    %39 = vector.multi_reduction <add>, %38, %cst_16 [0] : vector<16x1xf32> to vector<1xf32>
    %40 = vector.shape_cast %39 : vector<1xf32> to vector<1x1xf32>
    %41 = arith.extf %0 : vector<16x48xbf16> to vector<16x48xf32>
    %42 = arith.mulf %41, %41 : vector<16x48xf32>
    %cst_17 = arith.constant dense<0.000000e+00> : vector<16xf32>
    %43 = vector.multi_reduction <add>, %42, %cst_17 [1] : vector<16x48xf32> to vector<16xf32>
    %44 = vector.shape_cast %43 : vector<16xf32> to vector<16x1xf32>
    %c0_18 = arith.constant 0 : index
    %c0_19 = arith.constant 0 : index
    %45 = vector.load %arg6[%c0_18, %c0_19] : memref<16x48xbf16, #tpu.memory_space<vmem>>, vector<16x48xbf16>
    %cst_20 = arith.constant dense<0.000000e+00> : vector<16x16xf32>
    %46 = tpu.matmul %0, %45, %cst_20 {dimension_numbers = #tpu.dot_dimension_numbers<[1], [1], [0], [0], [0, 0, 1, 0], [], []>} : vector<16x48xbf16>, vector<16x48xbf16>, vector<16x16xf32> -> vector<16x16xf32>
    %47 = vector.extract_strided_slice %2 {offsets = [1, 0], sizes = [1, 16], strides = [1, 1]} : vector<8x128xf32> to vector<1x16xf32>
    %cst_21 = arith.constant 2.000000e+00 : f32
    %48 = vector.broadcast %cst_21 : f32 to vector<16x16xf32>
    %49 = arith.mulf %48, %46 : vector<16x16xf32>
    %50 = vector.broadcast %47 : vector<1x16xf32> to vector<16x16xf32>
    %51 = arith.subf %50, %49 : vector<16x16xf32>
    %52 = arith.mulf %37, %51 : vector<16x16xf32>
    %cst_22 = arith.constant dense<0.000000e+00> : vector<16xf32>
    %53 = vector.multi_reduction <add>, %52, %cst_22 [1] : vector<16x16xf32> to vector<16xf32>
    %54 = vector.shape_cast %53 : vector<16xf32> to vector<16x1xf32>
    %55 = arith.addf %54, %44 : vector<16x1xf32>
    %cst_23 = arith.constant dense<0.000000e+00> : vector<1xf32>
    %56 = vector.multi_reduction <add>, %55, %cst_23 [0] : vector<16x1xf32> to vector<1xf32>
    %57 = vector.shape_cast %56 : vector<1xf32> to vector<1x1xf32>
    %cst_24 = arith.constant dense<0xFF800000> : vector<16xf32>
    %58 = vector.multi_reduction <maximumf>, %18, %cst_24 [1] : vector<16x4xf32> to vector<16xf32>
    %59 = vector.shape_cast %58 : vector<16xf32> to vector<16x1xf32>
    %60 = tpu.iota {dimensions = array<i32: 1>} : vector<16x4xi32>
    %61 = vector.broadcast %59 : vector<16x1xf32> to vector<16x4xf32>
    %62 = arith.cmpf oeq, %18, %61 : vector<16x4xf32>
    %c4_i32 = arith.constant 4 : i32
    %63 = vector.broadcast %c4_i32 : i32 to vector<16x4xi32>
    %64 = arith.select %62, %60, %63 : vector<16x4xi1>, vector<16x4xi32>
    %cst_25 = arith.constant dense<2147483647> : vector<16xi32>
    %65 = vector.multi_reduction <minsi>, %64, %cst_25 [1] : vector<16x4xi32> to vector<16xi32>
    %66 = vector.shape_cast %65 : vector<16xi32> to vector<16x1xi32>
    %67 = vector.broadcast %59 : vector<16x1xf32> to vector<16x4xf32>
    %68 = arith.subf %18, %67 : vector<16x4xf32>
    %69 = math.exp %68 : vector<16x4xf32>
    %cst_26 = arith.constant dense<0.000000e+00> : vector<16xf32>
    %70 = vector.multi_reduction <add>, %69, %cst_26 [1] : vector<16x4xf32> to vector<16xf32>
    %71 = vector.shape_cast %70 : vector<16xf32> to vector<16x1xf32>
    %72 = math.log %71 : vector<16x1xf32>
    %73 = arith.addf %72, %59 : vector<16x1xf32>
    %74 = tpu.iota {dimensions = array<i32: 1>} : vector<16x4x16xi32>
    %75 = vector.shape_cast %1 : vector<16x16xi32> to vector<16x1x16xi32>
    %76 = vector.broadcast %75 : vector<16x1x16xi32> to vector<16x4x16xi32>
    %77 = arith.cmpi eq, %76, %74 : vector<16x4x16xi32>
    %78 = arith.extui %77 : vector<16x4x16xi1> to vector<16x4x16xi32>
    %79 = arith.sitofp %78 : vector<16x4x16xi32> to vector<16x4x16xf32>
    %cst_27 = arith.constant dense<0.000000e+00> : vector<16x4xf32>
    %80 = vector.multi_reduction <add>, %79, %cst_27 [2] : vector<16x4x16xf32> to vector<16x4xf32>
    %81 = arith.mulf %80, %18 : vector<16x4xf32>
    %cst_28 = arith.constant dense<0.000000e+00> : vector<16xf32>
    %82 = vector.multi_reduction <add>, %81, %cst_28 [1] : vector<16x4xf32> to vector<16xf32>
    %83 = vector.shape_cast %82 : vector<16xf32> to vector<16x1xf32>
    %cst_29 = arith.constant dense<0.000000e+00> : vector<1xf32>
    %84 = vector.multi_reduction <add>, %73, %cst_29 [0] : vector<16x1xf32> to vector<1xf32>
    %85 = vector.shape_cast %84 : vector<1xf32> to vector<1x1xf32>
    %cst_30 = arith.constant 1.600000e+01 : f32
    %86 = vector.broadcast %cst_30 : f32 to vector<1x1xf32>
    %87 = arith.mulf %86, %85 : vector<1x1xf32>
    %cst_31 = arith.constant dense<0.000000e+00> : vector<1xf32>
    %88 = vector.multi_reduction <add>, %83, %cst_31 [0] : vector<16x1xf32> to vector<1xf32>
    %89 = vector.shape_cast %88 : vector<1xf32> to vector<1x1xf32>
    %90 = arith.subf %87, %89 : vector<1x1xf32>
    %cst_32 = arith.constant 9.99999996E-13 : f32
    %91 = vector.broadcast %cst_32 : f32 to vector<16x1xf32>
    %92 = arith.addf %10, %91 : vector<16x1xf32>
    %93 = math.rsqrt %92 : vector<16x1xf32>
    %94 = vector.broadcast %93 : vector<16x1xf32> to vector<16x5xf32>
    %95 = arith.mulf %19, %94 : vector<16x5xf32>
    %cst_33 = arith.constant dense<0xFF800000> : vector<16xf32>
    %96 = vector.multi_reduction <maximumf>, %95, %cst_33 [1] : vector<16x5xf32> to vector<16xf32>
    %97 = vector.shape_cast %96 : vector<16xf32> to vector<16x1xf32>
    %98 = tpu.iota {dimensions = array<i32: 1>} : vector<16x5xi32>
    %99 = vector.broadcast %97 : vector<16x1xf32> to vector<16x5xf32>
    %100 = arith.cmpf oeq, %95, %99 : vector<16x5xf32>
    %c5_i32 = arith.constant 5 : i32
    %101 = vector.broadcast %c5_i32 : i32 to vector<16x5xi32>
    %102 = arith.select %100, %98, %101 : vector<16x5xi1>, vector<16x5xi32>
    %cst_34 = arith.constant dense<2147483647> : vector<16xi32>
    %103 = vector.multi_reduction <minsi>, %102, %cst_34 [1] : vector<16x5xi32> to vector<16xi32>
    %104 = vector.shape_cast %103 : vector<16xi32> to vector<16x1xi32>
    %cst_35 = arith.constant dense<0.000000e+00> : vector<1xf32>
    %105 = vector.multi_reduction <add>, %97, %cst_35 [0] : vector<16x1xf32> to vector<1xf32>
    %106 = vector.shape_cast %105 : vector<1xf32> to vector<1x1xf32>
    %cst_36 = arith.constant 0.000000e+00 : f32
    %107 = vector.broadcast %cst_36 : f32 to vector<1x1xf32>
    %108 = arith.subf %107, %106 : vector<1x1xf32>
    %109 = tpu.iota {dimensions = array<i32: 1>} : vector<16x128xi32>
    %c0_i32 = arith.constant 0 : i32
    %110 = vector.broadcast %c0_i32 : i32 to vector<16x128xi32>
    %111 = arith.cmpi eq, %109, %110 : vector<16x128xi32>
    %c0_i32_37 = arith.constant 0 : i32
    %112 = vector.shape_cast %66 : vector<16x1xi32> to vector<16x1xi32>
    %113 = vector.broadcast %112 : vector<16x1xi32> to vector<16x128xi32>
    %114 = vector.broadcast %c0_i32_37 : i32 to vector<16x128xi32>
    %115 = arith.select %111, %113, %114 : vector<16x128xi1>, vector<16x128xi32>
    %c1_i32 = arith.constant 1 : i32
    %116 = vector.broadcast %c1_i32 : i32 to vector<16x128xi32>
    %117 = arith.cmpi eq, %109, %116 : vector<16x128xi32>
    %c0_i32_38 = arith.constant 0 : i32
    %118 = vector.shape_cast %104 : vector<16x1xi32> to vector<16x1xi32>
    %119 = vector.broadcast %118 : vector<16x1xi32> to vector<16x128xi32>
    %120 = vector.broadcast %c0_i32_38 : i32 to vector<16x128xi32>
    %121 = arith.select %117, %119, %120 : vector<16x128xi1>, vector<16x128xi32>
    %122 = arith.addi %115, %121 : vector<16x128xi32>
    %c0_39 = arith.constant 0 : index
    %c0_40 = arith.constant 0 : index
    %123 = vector.load %arg8[%c0_39, %c0_40] : memref<16x128xi32, #tpu.memory_space<vmem>>, vector<16x128xi32>
    tpu.vector_store %arg8[%c0_39, %c0_40], %122 {strides = array<i32>} : memref<16x128xi32, #tpu.memory_space<vmem>>, vector<16x128xi32>,
    %124 = tpu.iota {dimensions = array<i32: 0>} : vector<8x128xi32>
    %125 = tpu.iota {dimensions = array<i32: 1>} : vector<8x128xi32>
    %c0_i32_41 = arith.constant 0 : i32
    %126 = vector.broadcast %c0_i32_41 : i32 to vector<8x128xi32>
    %127 = arith.cmpi eq, %125, %126 : vector<8x128xi32>
    %cst_42 = arith.constant 0.000000e+00 : f32
    %128 = vector.shape_cast %40 : vector<1x1xf32> to vector<1x1xf32>
    %129 = vector.broadcast %128 : vector<1x1xf32> to vector<8x128xf32>
    %130 = vector.broadcast %cst_42 : f32 to vector<8x128xf32>
    %131 = arith.select %127, %129, %130 : vector<8x128xi1>, vector<8x128xf32>
    %c1_i32_43 = arith.constant 1 : i32
    %132 = vector.broadcast %c1_i32_43 : i32 to vector<8x128xi32>
    %133 = arith.cmpi eq, %125, %132 : vector<8x128xi32>
    %cst_44 = arith.constant 0.000000e+00 : f32
    %134 = vector.shape_cast %57 : vector<1x1xf32> to vector<1x1xf32>
    %135 = vector.broadcast %134 : vector<1x1xf32> to vector<8x128xf32>
    %136 = vector.broadcast %cst_44 : f32 to vector<8x128xf32>
    %137 = arith.select %133, %135, %136 : vector<8x128xi1>, vector<8x128xf32>
    %138 = arith.addf %131, %137 : vector<8x128xf32>
    %c2_i32 = arith.constant 2 : i32
    %139 = vector.broadcast %c2_i32 : i32 to vector<8x128xi32>
    %140 = arith.cmpi eq, %125, %139 : vector<8x128xi32>
    %cst_45 = arith.constant 0.000000e+00 : f32
    %141 = vector.shape_cast %90 : vector<1x1xf32> to vector<1x1xf32>
    %142 = vector.broadcast %141 : vector<1x1xf32> to vector<8x128xf32>
    %143 = vector.broadcast %cst_45 : f32 to vector<8x128xf32>
    %144 = arith.select %140, %142, %143 : vector<8x128xi1>, vector<8x128xf32>
    %145 = arith.addf %138, %144 : vector<8x128xf32>
    %c3_i32 = arith.constant 3 : i32
    %146 = vector.broadcast %c3_i32 : i32 to vector<8x128xi32>
    %147 = arith.cmpi eq, %125, %146 : vector<8x128xi32>
    %cst_46 = arith.constant 0.000000e+00 : f32
    %148 = vector.shape_cast %108 : vector<1x1xf32> to vector<1x1xf32>
    %149 = vector.broadcast %148 : vector<1x1xf32> to vector<8x128xf32>
    %150 = vector.broadcast %cst_46 : f32 to vector<8x128xf32>
    %151 = arith.select %147, %149, %150 : vector<8x128xi1>, vector<8x128xf32>
    %152 = arith.addf %145, %151 : vector<8x128xf32>
    %c0_i32_47 = arith.constant 0 : i32
    %153 = vector.broadcast %c0_i32_47 : i32 to vector<8x128xi32>
    %154 = arith.cmpi eq, %124, %153 : vector<8x128xi32>
    %cst_48 = arith.constant 0.000000e+00 : f32
    %155 = vector.broadcast %cst_48 : f32 to vector<8x128xf32>
    %156 = arith.select %154, %152, %155 : vector<8x128xi1>, vector<8x128xf32>
    %c0_49 = arith.constant 0 : index
    %c0_50 = arith.constant 0 : index
    %157 = vector.load %arg9[%c0_49, %c0_50] : memref<8x128xf32, #tpu.memory_space<vmem>>, vector<8x128xf32>
    tpu.vector_store %arg9[%c0_49, %c0_50], %156 {strides = array<i32>} : memref<8x128xf32, #tpu.memory_space<vmem>>, vector<8x128xf32>,
    return
  }
  func.func @transform_0(%arg0: i32) -> (i32, i32) {
    %c0_i32 = arith.constant 0 : i32
    %c0_i32_0 = arith.constant 0 : i32
    return %arg0, %c0_i32 : i32, i32
  }
  func.func @transform_1(%arg0: i32) -> (i32, i32) {
    %c0_i32 = arith.constant 0 : i32
    %c0_i32_0 = arith.constant 0 : i32
    return %arg0, %c0_i32 : i32, i32
  }
  func.func @transform_2(%arg0: i32) -> (i32, i32) {
    %c0_i32 = arith.constant 0 : i32
    %c0_i32_0 = arith.constant 0 : i32
    %c0_i32_1 = arith.constant 0 : i32
    return %c0_i32, %c0_i32_0 : i32, i32
  }
  func.func @transform_3(%arg0: i32) -> (i32, i32) {
    %c0_i32 = arith.constant 0 : i32
    %c0_i32_0 = arith.constant 0 : i32
    %c0_i32_1 = arith.constant 0 : i32
    return %c0_i32, %c0_i32_0 : i32, i32
  }
  func.func @transform_4(%arg0: i32) -> (i32, i32) {
    %c0_i32 = arith.constant 0 : i32
    %c0_i32_0 = arith.constant 0 : i32
    %c0_i32_1 = arith.constant 0 : i32
    return %c0_i32, %c0_i32_0 : i32, i32
  }
  func.func @transform_5(%arg0: i32) -> (i32, i32) {
    %c0_i32 = arith.constant 0 : i32
    %c0_i32_0 = arith.constant 0 : i32
    %c0_i32_1 = arith.constant 0 : i32
    return %c0_i32, %c0_i32_0 : i32, i32
  }
  func.func @transform_6(%arg0: i32) -> (i32, i32) {
    %c0_i32 = arith.constant 0 : i32
    %c0_i32_0 = arith.constant 0 : i32
    %c0_i32_1 = arith.constant 0 : i32
    return %c0_i32, %c0_i32_0 : i32, i32
  }
  func.func @transform_7(%arg0: i32) -> (i32, i32) {
    %c0_i32 = arith.constant 0 : i32
    %c0_i32_0 = arith.constant 0 : i32
    return %arg0, %c0_i32 : i32, i32
  }
  func.func @transform_8(%arg0: i32) -> (i32, i32) {
    %c0_i32 = arith.constant 0 : i32
    %c0_i32_0 = arith.constant 0 : i32
    return %arg0, %c0_i32 : i32, i32
  }
}

</mosaic_0001>

<bundles_post_ra>
// kernel: squeeze.12
= control target key start
LH: loop header
LB: loop body
LE: loop exit
PB: predicated region body
PF: predicated region fallthrough
CT: control target
= control target key end

     0   :  { %s71_s8 = smov 116   ;;  %vm7_vm0 = vcmask 31744   ;;  %s72_s9 = smov 120   ;;  %s104_s0 = inlined_call_operand.vmem [shape: s32[32], index: 0, kind: input, shape index: {}]   ;;  %s105_s1 = inlined_call_operand.vmem [shape: s32[2,4,4], index: 1, kind: output, shape index: {}]  }
   0x1   :  { %v4_v0 = vld [vmem:[%s104_s0] sm:$0x1]  ;;  %s70_s0 = smov 124   ;;  %s73_s10 = smov 112  }
   0x2   :  { %5 = vst [vmem:[#allocation1] sm:$0x1] %v4_v0  ;;  %s74_s11 = smov 108   ;;  %s75_s12 = smov 104  }
   0x3   :  { %s76_s13 = smov 100  }
   0x9   :  { %v9_v1 = vld [vmem:[#allocation1] sm:$0x1]  }
   0xa   :  { %v21_v2 = vld [vmem:[#allocation1] sm:$0x1]   ;;  %10 = vrot.lane.b32.xlu0 %v9_v1, %s70_s0 }
   0xb   :  { %22 = vrot.lane.b32.xlu1 %v21_v2, %s71_s8  ;;  %v15_v3 = vld [vmem:[#allocation1] sm:$0x1]  }
   0xc   :  { %v27_v4 = vld [vmem:[#allocation1] sm:$0x1]  }
   0xd   :  { %v6_v5 = vld [vmem:[#allocation1] sm:$0x1]  }
   0xe   :  { %8 = vst.msk [vmem:[#allocation0] sm:$0x1] %vm7_vm0, %v6_v5   ;;  %16 = vrot.lane.b32.xlu0 %v15_v3, %s72_s9  ;;  %v33_v6 = vld [vmem:[#allocation1] sm:$0x1]  }
   0xf   :  { %28 = vrot.lane.b32.xlu1 %v27_v4, %s73_s10  ;;  %v39_v7 = vld [vmem:[#allocation1] sm:$0x1]  }
  0x10   :  { %v45_v8 = vld [vmem:[#allocation1] sm:$0x1]  }
  0x12   :  { %34 = vrot.lane.b32.xlu0 %v33_v6, %s74_s11 }
  0x13   :  { %40 = vrot.lane.b32.xlu1 %v39_v7, %s75_s12 }
  0x16   :  { %46 = vrot.lane.b32.xlu0 %v45_v8, %s76_s13 }
  0x7c   :  { %v11_v9 = vpop.permute.xlu0 %10  }
  0x7d   :  { %v23_v10 = vpop.permute.xlu1 %22   ;;  %14 = vst.msk [vmem:[#allocation0 + $0x1] sm:$0x1] %vm7_vm0, %v11_v9  }
  0x7e   :  { %26 = vst.msk [vmem:[#allocation0 + $0x3] sm:$0x1] %vm7_vm0, %v23_v10  }
  0x80   :  { %v17_v11 = vpop.permute.xlu0 %16  }
  0x81   :  { %v29_v12 = vpop.permute.xlu1 %28   ;;  %20 = vst.msk [vmem:[#allocation0 + $0x2] sm:$0x1] %vm7_vm0, %v17_v11  }
  0x82   :  { %32 = vst.msk [vmem:[#allocation0 + $0x8] sm:$0x1] %vm7_vm0, %v29_v12  }
  0x84   :  { %v35_v13 = vpop.permute.xlu0 %34  }
  0x85   :  { %v41_v14 = vpop.permute.xlu1 %40   ;;  %38 = vst.msk [vmem:[#allocation0 + $0x9] sm:$0x1] %vm7_vm0, %v35_v13  }
  0x86   :  { %44 = vst.msk [vmem:[#allocation0 + $0xa] sm:$0x1] %vm7_vm0, %v41_v14  }
  0x88   :  { %v54_v15 = vld [vmem:[#allocation0] sm:$0xf]  ;;  %v47_v16 = vpop.permute.xlu0 %46  }
  0x89   :  { %56 = vst [vmem:[%s105_s1] sm:$0xf] %v54_v15  ;;  %50 = vst.msk [vmem:[#allocation0 + $0xb] sm:$0x1] %vm7_vm0, %v47_v16  }
  0x90   :  { %v58_v17 = vld [vmem:[#allocation0 + $0x8] sm:$0xf] }
  0x91   :  { %62 = vst [vmem:[%s105_s1 + $0x4] sm:$0xf] %v58_v17 }

// kernel: dino_new_vq_wrapper_forward.1
= control target key start
LH: loop header
LB: loop body
LE: loop exit
PB: predicated region body
PF: predicated region fallthrough
CT: control target
= control target key end

     0   :  { %s1680_s27 = smov 0   ;;  %s2155_s0 = inlined_call_operand.vmem [shape: bf16[32,48], index: 0, kind: input, shape index: {}]   ;;  %s2156_s1 = inlined_call_operand.vmem [shape: s32[32,16], index: 1, kind: input, shape index: {}]   ;;  %s2157_s2 = inlined_call_operand.vmem [shape: bf16[48,32], index: 2, kind: input, shape index: {}]   ;;  %s2158_s3 = inlined_call_operand.vmem [shape: f32[1,32], index: 3, kind: input, shape index: {}]   ;;  %s2159_s4 = inlined_call_operand.vmem [shape: bf16[32,128], index: 4, kind: input, shape index: {}]   ;;  %s2160_s5 = inlined_call_operand.vmem [shape: bf16[16,48], index: 5, kind: input, shape index: {}]   ;;  %s2161_s6 = inlined_call_operand.vmem [shape: f32[8,128], index: 6, kind: input, shape index: {}]   ;;  %s2162_s7 = inlined_call_operand.vmem [shape: s32[32,128], index: 7, kind: output, shape index: {0}]   ;;  %s2163_s8 = inlined_call_operand.vmem [shape: f32[16,128], index: 8, kind: output, shape index: {1}]  }
   0x1 LB: > { %s1686_s28 = sadd.s32 4294967295, %s1626_s27   ;;  %p1509_p0 = scmp.ge.s32.totalorder %s1626_s27, 1  ;;  %s1626_s27 = sphi %s1680_s27, %s19_s27  }
   0x2   : > { %p277_p1 = scmp.lt.s32.totalorder %s1626_s27, 3 }
   0x4   : > { %p278_p2 = pnand %p1509_p0, %p277_p1 }
   0x5   : > { %v1598_v0 = vld [vmem:[%s2157_s2] sm:$0xff] (!%p278_p2)   ;;  %v1628_v1 = vmov (!%p278_p2), 0.0   ;;  %v1599_v2 = vld [vmem:[%s2157_s2 + $0x8] sm:$0xff] (!%p278_p2)   ;;  %vm1629_vm0 = vmmov (!%p278_p2), 0   ;;  %s1510_s11 = sshll.u32 (!%p278_p2), %s1686_s28, 1  ;;  %v1600_v3 = vld [vmem:[%s2157_s2 + $0x10] sm:$0xff] (!%p278_p2)   ;;  %v499_v11 = vlaneseq (!%p278_p2) }
   0x6   : > { %281 = sbr.rel (%p278_p2) target bundleno = 1219 (0x4c3), region = 48  ;;  %1557 = vmatprep.subr.bf16.mxu0 (!%p278_p2), %v1628_v1  ;;  %1567 = vmatprep.subr.bf16.mxu1 (!%p278_p2), %v1628_v1  ;;  %p321_p3 = scmp.lt.s32.totalorder (!%p278_p2), %s1510_s11, 3  ;;  %vm384_vm1 = vcmask (!%p278_p2), 392192   ;;  %v1631_v13 = vmov (!%p278_p2), 1966171168   ;;  %vm943_vm3 = vcmask (!%p278_p2), 125952  }
   0x7   : > { %1558 = vmatpush3.bf16.msra.mxu0 (!%p278_p2), %v1598_v0  ;;  %1563 = vmatprep.mubr.msk.bf16.mxu0 (!%p278_p2), %vm1629_vm0, %v1628_v1  ;;  %v1722_v12 = vand.u32 (!%p278_p2), 127, %v499_v11  ;;  %s1630_s18 = smov (!%p278_p2), 16   ;;  %v735_v14 = vunpack.c.l.s4 (!%p278_p2), %v1631_v13  ;;  %v1734_v15 = vshrl.u32 (!%p278_p2), %v499_v11, 7  ;;  %v1603_v39 = vld [vmem:[%s2159_s4] sm:$0xff] (!%p278_p2)   ;;  %v1604_v42 = vld [vmem:[%s2159_s4 + $0x8] sm:$0xff] (!%p278_p2)   ;;  %vm431_vm7 = vcmask (!%p278_p2), 261120  }
   0x8   : > { %1559 = vmatprep.subr.bf16.mxu0 (!%p278_p2), %v1628_v1  ;;  %1571 = vmatprep.mubr.msk.bf16.mxu1 (!%p278_p2), %vm1629_vm0, %v1628_v1  ;;  %v1782_v43 = vld [vmem:[%s2161_s6] sm:$0xff] (!%p278_p2)  ;;  %s1633_s12 = smov (!%p278_p2), 20   ;;  %s1634_s15 = smov (!%p278_p2), 112  }
   0x9   : > { %v736_v16 = vunpack.c.0.s8 (!%p278_p2), %v735_v14  ;;  %v1743_v22 = vsub.s32 (!%p278_p2), 0, %v1734_v15  ;;  %1568 = vmatpush3.bf16.msra.mxu1 (!%p278_p2), %v1603_v39  ;;  %v1785_v44 = vsub.s32 (!%p278_p2), 2, %v1734_v15  ;;  %v1517_v46 = vld [vmem:[%s2158_s3] ss:$0 sm:$0xff] (!%p278_p2)  ;;  %p338_p4 = scmp.lt.s32.totalorder (!%p278_p2), %s1686_s28, 1 }
   0xa   : > { %1569 = vmatprep.subr.bf16.mxu1 (!%p278_p2), %v1628_v1 }
   0xb   : > { %1560 = vmatpush3.bf16.msra.mxu0 (!%p278_p2), %v1599_v2  ;;  %v1738_v19 = vsub.s32 (!%p278_p2), %v736_v16, %v1734_v15  ;;  %v502_v45 = vrot.slane (!%p278_p2), %v1782_v43, %v1785_v44 }
   0xc   : > { %1561 = vmatprep.subr.bf16.mxu0 (!%p278_p2), %v1628_v1 }
   0xd   : > { %s2165_s11 = smov (!%p321_p3, %s1510_s11), 3  ;;  %1570 = vmatpush3.bf16.msra.mxu1 %v1604_v42  ;;  %504 = vrot.lane.b32.xlu0 %v502_v45, %s1630_s18  ;;  %s2167_s28 = smov (!%p338_p4, %s1686_s28), 1 }
   0xe   : > { %s1511_s14 = sshll.u32 %s2165_s11, 2  ;;  %s1513_s19 = sshll.u32 %s2165_s11, 3  ;;  %1575 = vmatprep.subr.bf16.mxu1 %v1628_v1 }
   0xf   : > { %s324_s17 = scalar_lea.vmem %s2155_s0, %s1511_s14  ;;  %1562 = vmatpush3.bf16.msra.mxu0 %v1600_v3  ;;  %s1732_s22 = scalar_lea.vmem %s2156_s1, %s1513_s19 }
  0x10   : > { %v1714_v4 = vld [vmem:[%s324_s17] sm:$0xff]   ;;  %v346_v60 = vld [vmem:[%s1732_s22 + $0x8] sm:$0xff]  ;;  %s1516_s16 = sshll.u32 %s2167_s28, 3 }
  0x11   : > { %v575_v5 = vunpack.c.l.bf16 %v1714_v4  ;;  %v576_v6 = vunpack.c.h.bf16 %v1714_v4  ;;  %v345_v17 = vld [vmem:[%s1732_s22] sm:$0xff]  ;;  %v789_v62 = vrot.slane %v346_v60, %v1738_v19  ;;  %s341_s20 = scalar_lea.vmem %s2163_s8, %s1516_s16  ;;  %s336_s22 = scalar_lea.vmem %s2162_s7, %s1513_s19 }
  0x12   : > { %1564 = vmatmul.mubr.msk.bf16.vlgmr.msra.gmra.mrb[0].mxu0 %vm384_vm1, %v1714_v4  ;;  %v733_v18 = vcombine.high %v345_v17, %v345_v17  ;;  %v740_v20 = vrot.slane %v345_v17, %v1738_v19 }
  0x13   : > { %v577_v7 = vmul.f32 %v575_v5, %v575_v5  ;;  %v578_v8 = vmul.f32 %v576_v6, %v576_v6  ;;  %v805_v63 = vrot.slane %v789_v62, %v1738_v19  ;;  %v797_v5 = vcombine.high %v789_v62, %v789_v62 }
  0x14   : > { %v747_v21 = vrot.slane %v733_v18, %v1738_v19  ;;  %v1746_v23 = vrot.slane %v740_v20, %v1738_v19  ;;  %v748_v58 = vcombine.high %v740_v20, %v740_v20  ;;  %v782_v20 = vcombine.high %v346_v60, %v346_v60 }
  0x15   : > { %v579_v9 = vsel %vm384_vm1, %v577_v7, 0.0  ;;  %v582_v10 = vsel %vm384_vm1, %v578_v8, 0.0  ;;  %v866_v3 = vrot.slane %v805_v63, %v1743_v22  ;;  %v819_v6 = vrot.slane %v797_v5, %v1738_v19 }
  0x16   : > { %580 = vadd.xlane.f32.xlu1 %v579_v9  ;;  %v749_v24 = vcombine.high %v747_v21, %v747_v21  ;;  %v834_v25 = vrot.slane %v1746_v23, %v1743_v22  ;;  %v1752_v27 = vrot.slane %v747_v21, %v1738_v19  ;;  %v770_v59 = vrot.slane %v748_v58, %v1738_v19 }
  0x17   : > { %vm903_vm9 = vcmp.eq.s32.totalorder %v866_v3, %v1734_v15  ;;  %v870_v9 = vrot.slane %v819_v6, %v1743_v22  ;;  %v827_v13 = vcombine.high %v805_v63, %v805_v63  ;;  %v829_v16 = vcombine.high %v819_v6, %v819_v6 }
  0x18   : > { %v777_v26 = vrot.slane %v749_v24, %v1738_v19  ;;  %vm895_vm2 = vcmp.eq.s32.totalorder %v834_v25, %v1734_v15  ;;  %v779_v29 = vcombine.high %v1752_v27, %v1752_v27  ;;  %v838_v61 = vrot.slane %v770_v59, %v1743_v22 }
  0x19   : > { %v1530_v30 = vsel %vm895_vm2, 1.0, %v1628_v1  ;;  %v1538_v7 = vsel %vm903_vm9, 1.0, %v1628_v1  ;;  %vm904_vm10 = vcmp.eq.s32.totalorder %v870_v9, %v1734_v15  ;;  %v780_v14 = vcombine.high %v770_v59, %v770_v59 }
  0x1a   : > { %583 = vadd.xlane.f32.xlu1 %v582_v10  ;;  %v854_v28 = vrot.slane %v777_v26, %v1743_v22  ;;  %v858_v31 = vrot.slane %v779_v29, %v1743_v22  ;;  %v944_v32 = vsel %vm943_vm3, %v1530_v30, 0.0  ;;  %v781_v37 = vcombine.high %v777_v26, %v777_v26 }
  0x1b   : > { %vm896_vm8 = vcmp.eq.s32.totalorder %v838_v61, %v1734_v15  ;;  %v968_v8 = vsel %vm943_vm3, %v1538_v7, 0.0  ;;  %v778_v10 = vcombine.high %v1746_v23, %v1746_v23  ;;  %v1539_v11 = vsel %vm904_vm10, 1.0, %v1628_v1 }
  0x1c   : > { %vm900_vm4 = vcmp.eq.s32.totalorder %v854_v28, %v1734_v15  ;;  %vm901_vm5 = vcmp.eq.s32.totalorder %v858_v31, %v1734_v15  ;;  %v862_v38 = vrot.slane %v781_v37, %v1743_v22  ;;  %v1531_v0 = vsel %vm896_vm8, 1.0, %v1628_v1 }
  0x1d   : > { %v1535_v33 = vsel %vm900_vm4, 1.0, %v1628_v1  ;;  %v1536_v35 = vsel %vm901_vm5, 1.0, %v1628_v1  ;;  %v947_v2 = vsel %vm943_vm3, %v1531_v0, 0.0  ;;  %v971_v17 = vsel %vm943_vm3, %v1539_v11, 0.0 }
  0x1e   : > { %v959_v34 = vsel %vm943_vm3, %v1535_v33, 0.0  ;;  %v962_v36 = vsel %vm943_vm3, %v1536_v35, 0.0  ;;  %vm902_vm6 = vcmp.eq.s32.totalorder %v862_v38, %v1734_v15  ;;  %v842_v18 = vrot.slane %v778_v10, %v1743_v22 }
  0x1f   : > { %v1537_v40 = vsel %vm902_vm6, 1.0, %v1628_v1  ;;  %v874_v21 = vrot.slane %v827_v13, %v1743_v22  ;;  %v846_v24 = vrot.slane %v780_v14, %v1743_v22  ;;  %v878_v23 = vrot.slane %v829_v16, %v1743_v22 }
  0x20   : > { %v965_v41 = vsel %vm943_vm3, %v1537_v40, 0.0  ;;  %vm897_vm11 = vcmp.eq.s32.totalorder %v842_v18, %v1734_v15  ;;  %v796_v29 = vrot.slane %v782_v20, %v1738_v19  ;;  %v1632_v0 = vmov 0  }
  0x21   : > { %v1532_v25 = vsel %vm897_vm11, 1.0, %v1628_v1  ;;  %vm905_vm12 = vcmp.eq.s32.totalorder %v874_v21, %v1734_v15  ;;  %vm898_vm13 = vcmp.eq.s32.totalorder %v846_v24, %v1734_v15  ;;  %vm906_vm14 = vcmp.eq.s32.totalorder %v878_v23, %v1734_v15  ;;  %1597 = vset.pattern.permute.xlu1 %v1632_v0  ;;  %1596 = vset.pattern.permute.xlu0 %v1632_v0 }
  0x22   : > { %v950_v26 = vsel %vm943_vm3, %v1532_v25, 0.0  ;;  %v1540_v28 = vsel %vm905_vm12, 1.0, %v1628_v1  ;;  %v1533_v31 = vsel %vm898_vm13, 1.0, %v1628_v1  ;;  %v812_v33 = vrot.slane %v796_v29, %v1738_v19 }
  0x23   : > { %v974_v30 = vsel %vm943_vm3, %v1540_v28, 0.0  ;;  %v953_v35 = vsel %vm943_vm3, %v1533_v31, 0.0  ;;  %v1872_v3 = vsub.s32 1, %v1734_v15  ;;  %vm1333_vm6 = vcmask 203936  }
  0x24   : > { %v882_v37 = vrot.slane %v812_v33, %v1743_v22  ;;  %v1020_v25 = vsub.s32 3, %v1734_v15  ;;  %v514_v23 = vrot.slane %v1782_v43, %v1743_v22  ;;  %vm1282_vm11 = vcmask 1041409  }
  0x25   : > { %vm1284_vm12 = vcmask 1042434   ;;  %vm1286_vm13 = vcmask 1043459  }
  0x2b   : > { %670 = vrot.lane.b32.xlu1 %v1722_v12, %s1630_s18 }
  0x2c   : > { %948 = vadd.xlane.f32.xlu0 %v947_v2 }
  0x30   : > { %969 = vadd.xlane.f32.xlu0 %v968_v8 }
  0x34   : > { %972 = vadd.xlane.f32.xlu0 %v971_v17 }
  0x38   : > { %951 = vadd.xlane.f32.xlu0 %v950_v26 }
  0x3c   : > { %975 = vadd.xlane.f32.xlu0 %v974_v30 }
  0x40   : > { %954 = vadd.xlane.f32.xlu0 %v953_v35 }
  0x4f   : > { %945 = vadd.xlane.f32.xlu1 %v944_v32  ;;  %v850_v32 = vrot.slane %v1752_v27, %v1743_v22 }
  0x51   : > { %vm899_vm15 = vcmp.eq.s32.totalorder %v850_v32, %v1734_v15 }
  0x52   : > { %v1534_v40 = vsel %vm899_vm15, 1.0, %v1628_v1 }
  0x53   : > { %960 = vadd.xlane.f32.xlu1 %v959_v34  ;;  %v798_v34 = vcombine.high %v796_v29, %v796_v29  ;;  %v956_v42 = vsel %vm943_vm3, %v1534_v40, 0.0 }
  0x55   : > { %v826_v38 = vrot.slane %v798_v34, %v1738_v19 }
  0x57   : > { %963 = vadd.xlane.f32.xlu1 %v962_v36  ;;  %v1541_v36 = vsel %vm906_vm14, 1.0, %v1628_v1  ;;  %v886_v27 = vrot.slane %v826_v38, %v1743_v22  ;;  %v830_v19 = vcombine.high %v826_v38, %v826_v38 }
  0x58   : > { %v977_v39 = vsel %vm943_vm3, %v1541_v36, 0.0 }
  0x59   : > { %978 = vadd.xlane.f32.xlu0 %v977_v39  ;;  %vm908_vm2 = vcmp.eq.s32.totalorder %v886_v27, %v1734_v15 }
  0x5b   : > { %966 = vadd.xlane.f32.xlu1 %v965_v41  ;;  %v828_v41 = vcombine.high %v812_v33, %v812_v33 }
  0x5d   : > { %957 = vadd.xlane.f32.xlu0 %v956_v42 }
  0x7f   : > { %v505_v2 = vpop.permute.xlu0 %504 }
  0xb9   : > { %v949_v33 = vpop.xlane.xlu0 %948 }
  0xbd   : > { %v1903_v34 = vpop.xlane.xlu0 %969 }
  0xc1   : > { %v1907_v36 = vpop.xlane.xlu0 %972 }
  0xc5   : > { %v952_v38 = vpop.xlane.xlu0 %951 }
  0xc9   : > { %v1913_v40 = vpop.xlane.xlu0 %975 }
  0xcd   : > { %v955_v27 = vpop.xlane.xlu0 %954 }
  0xe5   : > { %v422_v47 = vpop.f32.mrb[0].mxu0 }
  0xe6   : > { %v423_v48 = vadd.f32 %v1517_v46, %v422_v47  ;;  %v1565_v49 = vpop.f32.mrb[1].mxu0 }
  0xe7   : > { %v425_v50 = vpop.f32.mrb[2].mxu0  ;;  %v894_v49 = vrot.slane %v830_v19, %v1743_v22  ;;  %v1028_v19 = vsub.s32 4, %v1734_v15 }
  0xe8   : > { %v426_v51 = vadd.f32 %v1517_v46, %v425_v50  ;;  %v1566_v52 = vpop.f32.mrb[3].mxu0  ;;  %v429_v53 = vmul.f32 %v423_v48, %v423_v48  ;;  %v890_v46 = vrot.slane %v828_v41, %v1743_v22  ;;  %v1915_v41 = vpop.xlane.xlu0 %978 }
  0xe9   : > { %vm910_vm5 = vcmp.eq.s32.totalorder %v894_v49, %v1734_v15 }
  0xea   : > { %v438_v54 = vpack.c.bf16 %v426_v51, %v423_v48  ;;  %v432_v55 = vsel %vm431_vm7, %v429_v53, 0.0  ;;  %v430_v56 = vmul.f32 %v426_v51, %v426_v51  ;;  %v1543_v48 = vsel %vm908_vm2, 1.0, %v1628_v1 }
  0xeb   : > { %433 = vadd.xlane.f32.xlu1 %v432_v55  ;;  %vm909_vm4 = vcmp.eq.s32.totalorder %v890_v46, %v1734_v15  ;;  %v983_v50 = vsel %vm943_vm3, %v1543_v48, 0.0  ;;  %v1545_v53 = vsel %vm910_vm5, 1.0, %v1628_v1  ;;  %v1854_v55 = vpop.xlane.xlu1 %580  ;;  %vm1290_vm2 = vcmask 1045509  }
  0xec   : > { %1572 = vmatmul.mubr.msk.bf16.vlgmr.msra.gmra.mrb[0].mxu1 %vm431_vm7, %v438_v54  ;;  %v435_v57 = vsel %vm431_vm7, %v430_v56, 0.0  ;;  %v1544_v51 = vsel %vm909_vm4, 1.0, %v1628_v1  ;;  %v989_v54 = vsel %vm943_vm3, %v1545_v53, 0.0  ;;  %vm517_vm7 = vcmask 130048  }
  0xed   : > { %1577 = vmatprep.mubr.msk.bf16.mxu1 %vm1629_vm0, %v1628_v1  ;;  %vm907_vm0 = vcmp.eq.s32.totalorder %v882_v37, %v1734_v15  ;;  %v986_v52 = vsel %vm943_vm3, %v1544_v51, 0.0  ;;  %vm1292_vm4 = vcmask 1046534  }
  0xee   : > { %v1542_v45 = vsel %vm907_vm0, 1.0, %v1628_v1  ;;  %vm1288_vm0 = vcmask 1044484  }
  0xef   : > { %436 = vadd.xlane.f32.xlu1 %v435_v57  ;;  %v980_v47 = vsel %vm943_vm3, %v1542_v45, 0.0  ;;  %v1856_v56 = vpop.xlane.xlu1 %583  ;;  %vm661_vm3 = vcmask 162944  }
  0xf0   : > { %981 = vadd.xlane.f32.xlu0 %v980_v47  ;;  %v958_v47 = vpop.xlane.xlu0 %957 }
  0xf3   : > { %v1858_v57 = vpop.permute.xlu1 %670 }
  0xf4   : > { %984 = vadd.xlane.f32.xlu0 %v983_v50  ;;  %v1036_v50 = vsub.s32 5, %v1734_v15 }
  0xf7   : > { %v1860_v58 = vpop.xlane.xlu1 %945 }
  0xf8   : > { %987 = vadd.xlane.f32.xlu0 %v986_v52  ;;  %v1044_v52 = vsub.s32 6, %v1734_v15 }
  0xfb   : > { %v1862_v59 = vpop.xlane.xlu1 %960 }
  0xfc   : > { %990 = vadd.xlane.f32.xlu0 %v989_v54  ;;  %v1052_v54 = vsub.s32 7, %v1734_v15 }
  0xff   : > { %v1864_v60 = vpop.xlane.xlu1 %963 }
 0x103   : > { %v1866_v61 = vpop.xlane.xlu1 %966 }
 0x178   : > { %v1868_v62 = vpop.xlane.xlu1 %433 }
 0x179   : > { %v1327_v63 = vadd.f32 1e-12, %v1868_v62 }
 0x17b   : > { %1608 = vrsqrt.f32 %v1327_v63 }
 0x17c   : > { %v1884_v17 = vpop.xlane.xlu1 %436 }
 0x17d   : > { %v1328_v18 = vadd.f32 1e-12, %v1884_v17 }
 0x17f   : > { %1610 = vrsqrt.f32 %v1328_v18 }
 0x185   : > { %v1609_v8 = vpop.eup %1608 }
 0x189   : > { %v1611_v29 = vpop.eup %1610 }
 0x1bf   : > { %v492_v5 = vpop.f32.mrb[0].mxu1 }
 0x1c0   : > { %v1874_v6 = vadd.f32 %v505_v2, %v492_v5  ;;  %v1573_v7 = vpop.f32.mrb[1].mxu1  ;;  %v1880_v14 = vmul.f32 %v1609_v8, %v492_v5  ;;  %v509_v21 = vmul.f32 2.0, %v492_v5 }
 0x1c1   : > { %v495_v9 = vpop.f32.mrb[2].mxu1 }
 0x1c2   : > { %v1574_v10 = vpop.f32.mrb[3].mxu1  ;;  %v662_v11 = vsel %vm661_vm3, %v1874_v6, -inf  ;;  %v1005_v13 = vrot.slane %v1874_v6, %v1872_v3  ;;  %v1334_v16 = vsel %vm1333_vm6, %v1880_v14, -inf  ;;  %v997_v20 = vrot.slane %v1874_v6, %v1743_v22 }
 0x1c3   : > { %663 = vmax.xlane.f32.xlu1 %v662_v11  ;;  %v1013_v24 = vrot.slane %v1874_v6, %v1785_v44  ;;  %v1021_v26 = vrot.slane %v1874_v6, %v1020_v25  ;;  %v1895_v28 = vsub.f32 %v514_v23, %v509_v21  ;;  %v1899_v31 = vmul.f32 %v1611_v29, %v495_v9 }
 0x1c4   : > { %1008 = vbcast.lane.b32.xlu0 %v1005_v13, 272  ;;  %v1905_v35 = vadd.f32 %v505_v2, %v495_v9  ;;  %v510_v42 = vmul.f32 2.0, %v495_v9  ;;  %v1029_v49 = vrot.slane %v1874_v6, %v1028_v19  ;;  %v1037_v51 = vrot.slane %v1874_v6, %v1036_v50 }
 0x1c5   : > { %v518_v30 = vsel %vm517_vm7, %v1895_v28, inf  ;;  %v1337_v32 = vsel %vm1333_vm6, %v1899_v31, -inf  ;;  %v1045_v53 = vrot.slane %v1874_v6, %v1044_v52  ;;  %v1053_v0 = vrot.slane %v1874_v6, %v1052_v54 }
 0x1c6   : > { %v1077_v37 = vrot.slane %v1905_v35, %v1785_v44  ;;  %v665_v39 = vsel %vm661_vm3, %v1905_v35, -inf  ;;  %v1061_v45 = vrot.slane %v1905_v35, %v1743_v22  ;;  %v1069_v46 = vrot.slane %v1905_v35, %v1872_v3  ;;  %v1928_v22 = vpop.xlane.xlu0 %981 }
 0x1c7   : > { %1335 = vmax.xlane.f32.xlu1 %v1334_v16  ;;  %v1921_v44 = vsub.f32 %v514_v23, %v510_v42  ;;  %v1085_v7 = vrot.slane %v1905_v35, %v1020_v25  ;;  %v1093_v8 = vrot.slane %v1905_v35, %v1028_v19  ;;  %v1101_v11 = vrot.slane %v1905_v35, %v1036_v50 }
 0x1c8   : > { %v1109_v13 = vrot.slane %v1905_v35, %v1044_v52  ;;  %v1117_v16 = vrot.slane %v1905_v35, %v1052_v54 }
 0x1c9   : > { %v521_v48 = vsel %vm517_vm7, %v1921_v44, inf }
 0x1ca   : > { %v1934_v63 = vpop.xlane.xlu0 %984 }
 0x1ce   : > { %v1937_v2 = vpop.xlane.xlu0 %987 }
 0x1d2   : > { %v1940_v5 = vpop.xlane.xlu0 %990 }
 0x1d8   : > { %1000 = vbcast.lane.b32.xlu1 %v997_v20, 272 }
 0x1dc   : > { %1016 = vbcast.lane.b32.xlu1 %v1013_v24, 272 }
 0x1e0   : > { %1024 = vbcast.lane.b32.xlu1 %v1021_v26, 272 }
 0x1e3   : > { %519 = vmin.xlane.f32.xlu0 %v518_v30 }
 0x1e7   : > { %1338 = vmax.xlane.f32.xlu0 %v1337_v32 }
 0x1fd   : > { %1080 = vbcast.lane.b32.xlu0 %v1077_v37, 272 }
 0x204   : > { %666 = vmax.xlane.f32.xlu1 %v665_v39  ;;  %v1606_v39 = vld [vmem:[%s2160_s5] sm:$0xff]  }
 0x205   : > { %v593_v42 = vsel %vm384_vm1, %v1606_v39, 0 }
 0x206   : > { %1576 = vmatpush3.bf16.xpose.msra.mxu1 %v593_v42 }
 0x20d   : > { %1578 = vmatmul.mubr.msk.bf16.vlgmr.msra.gmra.mrb[4].mxu1 %vm384_vm1, %v1714_v4 }
 0x215   : > { %1064 = vbcast.lane.b32.xlu1 %v1061_v45, 272 }
 0x219   : > { %1072 = vbcast.lane.b32.xlu1 %v1069_v46, 272 }
 0x21c   : > { %522 = vmin.xlane.f32.xlu0 %v521_v48 }
 0x21d   : > { %1032 = vbcast.lane.b32.xlu1 %v1029_v49, 272 }
 0x221   : > { %1040 = vbcast.lane.b32.xlu1 %v1037_v51, 272 }
 0x225   : > { %1048 = vbcast.lane.b32.xlu1 %v1045_v53, 272 }
 0x229   : > { %1056 = vbcast.lane.b32.xlu1 %v1053_v0, 272 }
 0x22d   : > { %1342 = vrot.lane.b32.xlu1 %v1722_v12, %s1633_s12 }
 0x232   : > { %1088 = vbcast.lane.b32.xlu0 %v1085_v7, 272 }
 0x236   : > { %v1009_v9 = vpop.permute.xlu0 %1008  ;;  %1096 = vbcast.lane.b32.xlu0 %v1093_v8, 272 }
 0x237   : > { %v1139_v10 = vmul.f32 %v1009_v9, %v949_v33 }
 0x239   : > { %1174 = vperm.xlu1 %1597, %v1139_v10  }
 0x23a   : > { %1104 = vbcast.lane.b32.xlu0 %v1101_v11, 272 }
 0x23e   : > { %1112 = vbcast.lane.b32.xlu0 %v1109_v13, 272 }
 0x242   : > { %1120 = vbcast.lane.b32.xlu0 %v1117_v16, 272 }
 0x250   : > { %v1947_v18 = vpop.xlane.xlu1 %663 }
 0x251   : > { %vm668_vm10 = vcmp.eq.f32.partialorder %v1874_v6, %v1947_v18 }
 0x252   : > { %v672_v13 = vsel %vm668_vm10, %v1858_v57, 4  ;;  %vm1294_vm10 = vcmask 1047559  }
 0x254   : > { %v1336_v20 = vpop.xlane.xlu1 %1335 }
 0x255   : > { %vm1340_vm1 = vcmp.eq.f32.partialorder %v1880_v14, %v1336_v20 }
 0x258   : > { %v1001_v21 = vpop.permute.xlu1 %1000 }
 0x259   : > { %v1138_v24 = vmul.f32 %v1001_v21, %v1860_v58 }
 0x25b   : > { %1171 = vperm.xlu0 %1596, %v1138_v24  }
 0x25c   : > { %v1017_v25 = vpop.permute.xlu1 %1016 }
 0x25d   : > { %v1140_v23 = vmul.f32 %v1017_v25, %v952_v38 }
 0x25f   : > { %1177 = vperm.xlu1 %1597, %v1140_v23   ;;  %v2013_v23 = vsub.s32 %v1722_v12, %v1734_v15 }
 0x260   : > { %v1025_v26 = vpop.permute.xlu1 %1024 }
 0x261   : > { %v1141_v29 = vmul.f32 %v1025_v26, %v955_v27 }
 0x263   : > { %1180 = vperm.xlu1 %1597, %v1141_v29  }
 0x270   : > { %v520_v30 = vpop.xlane.xlu0 %519 }
 0x271   : > { %v566_v54 = vadd.f32 %v520_v30, %v1868_v62  ;;  %vm526_vm8 = vcmp.eq.f32.partialorder %v1895_v28, %v520_v30 }
 0x274   : > { %v1950_v32 = vpop.xlane.xlu0 %1338 }
 0x275   : > { %v1953_v33 = vadd.f32 %v1950_v32, %v1336_v20  ;;  %v2007_v20 = vsel %vm661_vm3, %v672_v13, 2147483647  ;;  %vm1341_vm15 = vcmp.eq.f32.partialorder %v1899_v31, %v1950_v32 }
 0x276   : > { %v676_v21 = vshra.s32 %v2007_v20, 16 }
 0x278   : > { %v1081_v45 = vpop.permute.xlu0 %1080  ;;  %v2015_v29 = vcvt.s32.f32 %v676_v21 }
 0x279   : > { %v1148_v19 = vmul.f32 %v1081_v45, %v1913_v40 }
 0x291   : > { %v1955_v37 = vpop.xlane.xlu1 %666 }
 0x292   : > { %vm669_vm14 = vcmp.eq.f32.partialorder %v1905_v35, %v1955_v37 }
 0x295   : > { %v1065_v58 = vpop.permute.xlu1 %1064 }
 0x296   : > { %v1146_v40 = vmul.f32 %v1065_v58, %v1903_v34 }
 0x299   : > { %v1073_v38 = vpop.permute.xlu1 %1072 }
 0x29a   : > { %v1147_v27 = vmul.f32 %v1073_v38, %v1907_v36  ;;  %v704_v38 = vsub.f32 %v1874_v6, %v1947_v18 }
 0x29c   : > { %1198 = vperm.xlu0 %1596, %v1147_v27  }
 0x29d   : > { %v1033_v46 = vpop.permute.xlu1 %1032 }
 0x29e   : > { %v1142_v48 = vmul.f32 %v1033_v46, %v958_v47 }
 0x2a0   : > { %1201 = vperm.xlu0 %1596, %v1148_v19   ;;  %1183 = vperm.xlu1 %1597, %v1142_v48   ;;  %v706_v19 = vmul.f32 1.442695, %v704_v38 }
 0x2a1   : > { %v1041_v49 = vpop.permute.xlu1 %1040 }
 0x2a2   : > { %v1143_v50 = vmul.f32 %v1041_v49, %v1862_v59 }
 0x2a4   : > { %1186 = vperm.xlu1 %1597, %v1143_v50  }
 0x2a5   : > { %v1049_v51 = vpop.permute.xlu1 %1048 }
 0x2a6   : > { %v1144_v52 = vmul.f32 %v1049_v51, %v1864_v60 }
 0x2a8   : > { %1189 = vperm.xlu1 %1597, %v1144_v52  }
 0x2a9   : > { %v523_v36 = vpop.xlane.xlu0 %522  ;;  %v1967_v53 = vpop.permute.xlu1 %1056 }
 0x2aa   : > { %v567_v47 = vadd.f32 %v523_v36, %v1884_v17  ;;  %vm527_vm9 = vcmp.eq.f32.partialorder %v1921_v44, %v523_v36  ;;  %v705_v44 = vsub.f32 %v1905_v35, %v1955_v37  ;;  %v673_v36 = vsel %vm669_vm14, %v1858_v57, 4 }
 0x2ab   : > { %vm1384_vm14 = vcmp.eq.s32.totalorder %v1722_v12, 0 }
 0x2ac   : > { %v1972_v4 = vadd.f32 %v567_v47, %v566_v54  ;;  %1195 = vperm.xlu1 %1597, %v1146_v40   ;;  %v708_v24 = vmul.f32 1.442695, %v705_v44  ;;  %v2034_v54 = vsel %vm661_vm3, %v673_v36, 2147483647 }
 0x2ad   : > { %v1089_v59 = vpop.permute.xlu0 %1088  ;;  %v1975_v0 = vpop.permute.xlu1 %1342  ;;  %v691_v47 = vshra.s32 %v2034_v54, 16 }
 0x2ae   : > { %v1149_v60 = vmul.f32 %v1089_v59, %v1915_v41  ;;  %v1979_v7 = vsel %vm1340_vm1, %v1975_v0, 5  ;;  %v528_v41 = vsel %vm526_vm8, %v1722_v12, 16  ;;  %1612 = vpow2.f32 %v708_v24 }
 0x2af   : > { %v1988_v10 = vsel %vm517_vm7, %v528_v41, 2147483647  ;;  %1614 = vpow2.f32 %v706_v19  ;;  %v1345_v40 = vsel %vm1341_vm15, %v1975_v0, 5  ;;  %vm718_vm8 = vcmask 31744  }
 0x2b0   : > { %1204 = vperm.xlu0 %1596, %v1149_v60   ;;  %v532_v11 = vshra.s32 %v1988_v10, 16  ;;  %v2039_v59 = vsel %vm1333_vm6, %v1345_v40, 2147483647  ;;  %vm1397_vm15 = vcmp.eq.s32.totalorder %v1722_v12, 2 }
 0x2b1   : > { %v1097_v8 = vpop.permute.xlu0 %1096  ;;  %v1363_v60 = vshra.s32 %v2039_v59, 16 }
 0x2b2   : > { %v1150_v62 = vmul.f32 %v1097_v8, %v1928_v22  ;;  %v529_v22 = vsel %vm527_vm9, %v1722_v12, 16 }
 0x2b3   : > { %v2045_v57 = vcvt.s32.f32 %v1363_v60 }
 0x2b4   : > { %1207 = vperm.xlu0 %1596, %v1150_v62  }
 0x2b5   : > { %v1105_v34 = vpop.permute.xlu0 %1104 }
 0x2b6   : > { %v1151_v17 = vmul.f32 %v1105_v34, %v1934_v63  ;;  %v1993_v63 = vsel %vm517_vm7, %v529_v22, 2147483647 }
 0x2b7   : > { %v547_v28 = vshra.s32 %v1993_v63, 16 }
 0x2b8   : > { %1210 = vperm.xlu0 %1596, %v1151_v17   ;;  %v1175_v26 = vpop.permute.xlu1 %1174  ;;  %v1613_v50 = vpop.eup %1612 }
 0x2b9   : > { %v1113_v9 = vpop.permute.xlu0 %1112  ;;  %v2004_v16 = vcvt.s32.f32 %v547_v28  ;;  %v1225_v39 = vrot.slane %v1175_v26, %v2013_v23  ;;  %v1615_v52 = vpop.eup %1614 }
 0x2ba   : > { %v1152_v14 = vmul.f32 %v1113_v9, %v1937_v2  ;;  %v1997_v2 = vcvt.s32.f32 %v532_v11 }
 0x2bc   : > { %1213 = vperm.xlu0 %1596, %v1152_v14  }
 0x2bd   : > { %v1121_v25 = vpop.permute.xlu0 %1120 }
 0x2be   : > { %v1153_v6 = vmul.f32 %v1121_v25, %v1940_v5  ;;  %v2041_v5 = vcvt.s32.f32 %v691_v47  ;;  %v675_v47 = vand.u32 65535, %v2007_v20 }
 0x2d0   : > { %535 = vmin.xlane.f32.xlu1 %v1997_v2 }
 0x2d4   : > { %550 = vmin.xlane.f32.xlu1 %v2004_v16 }
 0x2da   : > { %v1172_v30 = vpop.permute.xlu0 %1171 }
 0x2db   : > { %v1221_v58 = vrot.slane %v1172_v30, %v2013_v23  ;;  %679 = vmin.xlane.f32.xlu0 %v2015_v29 }
 0x2dd   : > { %v1283_v42 = vsel %vm1282_vm11, %v1225_v39, %v1221_v58 }
 0x2de   : > { %v1178_v27 = vpop.permute.xlu1 %1177 }
 0x2df   : > { %v1229_v45 = vrot.slane %v1178_v27, %v2013_v23 }
 0x2e1   : > { %v1285_v46 = vsel %vm1284_vm12, %v1229_v45, %v1283_v42 }
 0x2e2   : > { %v1181_v48 = vpop.permute.xlu1 %1180 }
 0x2e3   : > { %v1233_v49 = vrot.slane %v1181_v48, %v2013_v23  ;;  %v531_v48 = vand.u32 65535, %v1988_v10 }
 0x2e5   : > { %v1287_v51 = vsel %vm1286_vm13, %v1233_v49, %v1285_v46  ;;  %714 = vrot.lane.b32.xlu1 %v1613_v50, %s1634_s15  ;;  %v533_v50 = vcvt.s32.f32 %v531_v48 }
 0x2f1   : > { %712 = vrot.lane.b32.xlu0 %v1615_v52, %s1634_s15 }
 0x2f5   : > { %1216 = vperm.xlu0 %1596, %v1153_v6  }
 0x314   : > { %694 = vmin.xlane.f32.xlu0 %v2041_v5 }
 0x318   : > { %1366 = vmin.xlane.f32.xlu0 %v2045_v57 }
 0x31b   : > { %v1199_v8 = vpop.permute.xlu0 %1198 }
 0x31c   : > { %v1257_v11 = vrot.slane %v1199_v8, %v2013_v23  ;;  %v1346_v8 = vsel %vm1333_vm6, %v1979_v7, 2147483647 }
 0x31f   : > { %v1184_v31 = vpop.permute.xlu1 %1183  ;;  %v1202_v14 = vpop.permute.xlu0 %1201 }
 0x320   : > { %v1237_v35 = vrot.slane %v1184_v31, %v2013_v23  ;;  %v1261_v13 = vrot.slane %v1202_v14, %v2013_v23  ;;  %v677_v31 = vcvt.s32.f32 %v675_v47 }
 0x322   : > { %v1289_v32 = vsel %vm1288_vm0, %v1237_v35, %v1287_v51  ;;  %v546_v51 = vand.u32 65535, %v1993_v63  ;;  %v629_v35 = vpop.f32.mrb[4].mxu1 }
 0x323   : > { %v1187_v0 = vpop.permute.xlu1 %1186  ;;  %v636_v14 = vmul.f32 2.0, %v629_v35 }
 0x324   : > { %v1241_v62 = vrot.slane %v1187_v0, %v2013_v23  ;;  %v548_v36 = vcvt.s32.f32 %v546_v51 }
 0x326   : > { %v1291_v34 = vsel %vm1290_vm2, %v1241_v62, %v1289_v32  ;;  %v1579_v32 = vpop.f32.mrb[5].mxu1  ;;  %v1348_v62 = vshra.s32 %v1346_v8, 16 }
 0x327   : > { %v1190_v17 = vpop.permute.xlu1 %1189  ;;  %v632_v0 = vpop.f32.mrb[6].mxu1 }
 0x328   : > { %v1245_v9 = vrot.slane %v1190_v17, %v2013_v23  ;;  %v1580_v20 = vpop.f32.mrb[7].mxu1 }
 0x32a   : > { %v2054_v41 = vsel %vm1292_vm4, %v1245_v9, %v1291_v34  ;;  %v1350_v34 = vcvt.s32.f32 %v1348_v62 }
 0x32b   : > { %v1196_v22 = vpop.permute.xlu1 %1195 }
 0x32c   : > { %v1253_v28 = vrot.slane %v1196_v22, %v2013_v23  ;;  %v641_v22 = vrot.slane %v1782_v43, %v1872_v3 }
 0x32e   : > { %v1296_v44 = vsel %vm1282_vm11, %v1257_v11, %v1253_v28 }
 0x32f   : > { %v1205_v21 = vpop.permute.xlu0 %1204  ;;  %v1297_v24 = vsel %vm1284_vm12, %v1261_v13, %v1296_v44  ;;  %v642_v44 = vsub.f32 %v641_v22, %v636_v14 }
 0x330   : > { %v1265_v25 = vrot.slane %v1205_v21, %v2013_v23  ;;  %v637_v21 = vmul.f32 2.0, %v632_v0 }
 0x332   : > { %v1298_v26 = vsel %vm1286_vm13, %v1265_v25, %v1297_v24  ;;  %vm1387_vm13 = vcmp.eq.s32.totalorder %v1722_v12, 1 }
 0x333   : > { %v1208_v30 = vpop.permute.xlu0 %1207 }
 0x334   : > { %v1269_v39 = vrot.slane %v1208_v30, %v2013_v23 }
 0x336   : > { %v1299_v58 = vsel %vm1288_vm0, %v1269_v39, %v1298_v26  ;;  %vm1400_vm0 = vcmp.eq.s32.totalorder %v1722_v12, 3 }
 0x337   : > { %v1211_v42 = vpop.permute.xlu0 %1210 }
 0x338   : > { %v1273_v38 = vrot.slane %v1211_v42, %v2013_v23 }
 0x33a   : > { %v1300_v27 = vsel %vm1290_vm2, %v1273_v38, %v1299_v58  ;;  %v643_v58 = vsub.f32 %v641_v22, %v637_v21  ;;  %vm1403_vm2 = vcmp.eq.s32.totalorder %v1734_v15, 0 }
 0x33b   : > { %v1214_v45 = vpop.permute.xlu0 %1213 }
 0x33c   : > { %v1277_v46 = vrot.slane %v1214_v45, %v2013_v23 }
 0x33e   : > { %v2069_v19 = vsel %vm1292_vm4, %v1277_v46, %v1300_v27 }
 0x35d   : > { %v536_v49 = vpop.xlane.xlu1 %535 }
 0x35e   : > { %vm537_vm5 = vcmp.eq.f32.partialorder %v1997_v2, %v536_v49  ;;  %v542_v9 = vcvt.f32.s32 %v536_v49 }
 0x35f   : > { %v538_v52 = vsel %vm537_vm5, %v533_v50, inf }
 0x360   : > { %539 = vmin.xlane.f32.xlu1 %v538_v52 }
 0x361   : > { %v551_v6 = vpop.xlane.xlu1 %550 }
 0x362   : > { %vm552_vm3 = vcmp.eq.f32.partialorder %v2004_v16, %v551_v6  ;;  %v1145_v16 = vmul.f32 %v1967_v53, %v1866_v61  ;;  %v543_v61 = vshll.u32 %v542_v9, 16  ;;  %v557_v53 = vcvt.f32.s32 %v551_v6 }
 0x363   : > { %v553_v40 = vsel %vm552_vm3, %v548_v36, inf  ;;  %v690_v6 = vand.u32 65535, %v2034_v54  ;;  %v1347_v36 = vand.u32 65535, %v1346_v8 }
 0x364   : > { %554 = vmin.xlane.f32.xlu1 %v553_v40  ;;  %v558_v24 = vshll.u32 %v557_v53, 16 }
 0x368   : > { %v2076_v60 = vpop.xlane.xlu0 %679 }
 0x369   : > { %vm681_vm1 = vcmp.eq.f32.partialorder %v2015_v29, %v2076_v60  ;;  %v715_v29 = vpop.permute.xlu1 %714 }
 0x36a   : > { %v682_v10 = vsel %vm681_vm1, %v677_v31, inf  ;;  %v722_v17 = vsel %vm718_vm8, %v715_v29, 0.0  ;;  %v1362_v31 = vand.u32 65535, %v2039_v59 }
 0x36c   : > { %v713_v63 = vpop.permute.xlu0 %712 }
 0x36d   : > { %v719_v2 = vsel %vm718_vm8, %v713_v63, 0.0 }
 0x36e   : > { %720 = vadd.xlane.f32.xlu0 %v719_v2 }
 0x374   : > { %v1217_v30 = vpop.permute.xlu0 %1216 }
 0x375   : > { %1192 = vperm.xlu1 %1597, %v1145_v16   ;;  %v1281_v27 = vrot.slane %v1217_v30, %v2013_v23 }
 0x377   : > { %v1302_v51 = vsel %vm1294_vm10, %v1281_v27, %v2069_v19  ;;  %v1349_v19 = vcvt.s32.f32 %v1347_v36 }
 0x399   : > { %1351 = vmin.xlane.f32.xlu1 %v1350_v34 }
 0x39d   : > { %723 = vadd.xlane.f32.xlu1 %v722_v17 }
 0x3a1   : > { %v2099_v52 = vpop.xlane.xlu0 %694 }
 0x3a2   : > { %vm696_vm11 = vcmp.eq.f32.partialorder %v2041_v5, %v2099_v52 }
 0x3a5   : > { %v2105_v40 = vpop.xlane.xlu0 %1366 }
 0x3a6   : > { %vm1368_vm12 = vcmp.eq.f32.partialorder %v2045_v57, %v2105_v40  ;;  %v569_v57 = vrot.slane %v1972_v4, 4  ;;  %v1373_v15 = vcvt.f32.s32 %v2105_v40 }
 0x3a8   : > { %v570_v14 = vadd.f32 %v569_v57, %v1972_v4 }
 0x3ed   : > { %v540_v11 = vpop.xlane.xlu1 %539 }
 0x3ee   : > { %v541_v28 = vcvt.f32.s32 %v540_v11 }
 0x3f0   : > { %v544_v13 = vadd.s32 %v543_v61, %v541_v28 }
 0x3f1   : > { %v555_v7 = vpop.xlane.xlu1 %554 }
 0x3f2   : > { %v556_v25 = vcvt.f32.s32 %v555_v7  ;;  %vm560_vm6 = vcmp.eq.s32.totalorder %v1722_v12, %v544_v13 }
 0x3f3   : > { %v1526_v26 = vsel %vm560_vm6, 1.0, %v1628_v1 }
 0x3f4   : > { %v559_v39 = vadd.s32 %v558_v24, %v556_v25  ;;  %v644_v42 = vmul.f32 %v1526_v26, %v642_v44 }
 0x3f5   : > { %v1193_v38 = vpop.permute.xlu1 %1192 }
 0x3f6   : > { %v1249_v43 = vrot.slane %v1193_v38, %v2013_v23  ;;  %v646_v3 = vsel %vm517_vm7, %v644_v42, 0.0  ;;  %vm561_vm9 = vcmp.eq.s32.totalorder %v1722_v12, %v559_v39  ;;  %v1308_v23 = vsel %vm718_vm8, %v1302_v51, 0.0 }
 0x3f7   : > { %647 = vadd.xlane.f32.xlu0 %v646_v3  ;;  %v1527_v45 = vsel %vm561_vm9, 1.0, %v1628_v1  ;;  %v692_v1 = vcvt.s32.f32 %v690_v6 }
 0x3f8   : > { %v645_v46 = vmul.f32 %v1527_v45, %v643_v58  ;;  %v1295_v48 = vsel %vm1294_vm10, %v1249_v43, %v2054_v41 }
 0x3f9   : > { %v1305_v49 = vsel %vm718_vm8, %v1295_v48, 0.0  ;;  %v697_v41 = vsel %vm696_vm11, %v692_v1, inf }
 0x3fa   : > { %v649_v50 = vsel %vm517_vm7, %v645_v46, 0.0 }
 0x3fb   : > { %650 = vadd.xlane.f32.xlu1 %v649_v50  ;;  %1306 = vadd.xlane.f32.xlu0 %v1305_v49  ;;  %v721_v2 = vpop.xlane.xlu0 %720 }
 0x3ff   : > { %1309 = vadd.xlane.f32.xlu1 %v1308_v23  ;;  %683 = vmin.xlane.f32.xlu0 %v682_v10  ;;  %v1364_v10 = vcvt.s32.f32 %v1362_v31 }
 0x401   : > { %v1369_v5 = vsel %vm1368_vm12, %v1364_v10, inf }
 0x403   : > { %698 = vmin.xlane.f32.xlu0 %v697_v41 }
 0x426   : > { %v2107_v47 = vpop.xlane.xlu1 %1351 }
 0x427   : > { %vm1353_vm7 = vcmp.eq.f32.partialorder %v1350_v34, %v2107_v47  ;;  %v1377_v34 = vrot.slane %v1953_v33, 4 }
 0x428   : > { %v1354_v54 = vsel %vm1353_vm7, %v1349_v19, inf }
 0x429   : > { %1355 = vmin.xlane.f32.xlu1 %v1354_v54  ;;  %v1378_v9 = vadd.f32 %v1377_v34, %v1953_v33 }
 0x42a   : > { %v724_v63 = vpop.xlane.xlu1 %723 }
 0x42b   : > { %1616 = vlog2.f32 %v724_v63  ;;  %v1379_v53 = vrot.slane %v1378_v9, 2 }
 0x42c   : > { %1618 = vlog2.f32 %v721_v2  ;;  %v686_v2 = vcvt.f32.s32 %v2076_v60 }
 0x42d   : > { %1370 = vmin.xlane.f32.xlu1 %v1369_v5  ;;  %v1380_v25 = vadd.f32 %v1379_v53, %v1378_v9  ;;  %v1374_v9 = vshll.u32 %v1373_v15, 16 }
 0x42f   : > { %v1381_v42 = vrot.slane %v1380_v25, 1 }
 0x431   : > { %v1382_v45 = vadd.f32 %v1381_v42, %v1380_v25 }
 0x433   : > { %v1383_v23 = vsub.f32 0.0, %v1382_v45 }
 0x435   : > { %v1617_v35 = vpop.eup %1616  ;;  %v1401_v54 = vsel %vm1400_vm0, %v1383_v23, 0.0 }
 0x436   : > { %v1619_v32 = vpop.eup %1618  ;;  %v728_v16 = vmul.f32 0.6931472, %v1617_v35  ;;  %v1358_v35 = vcvt.f32.s32 %v2107_v47 }
 0x437   : > { %v726_v0 = vmul.f32 0.6931472, %v1619_v32 }
 0x438   : > { %v730_v59 = vadd.f32 %v728_v16, %v1955_v37 }
 0x439   : > { %v729_v20 = vadd.f32 %v726_v0, %v1947_v18  ;;  %v571_v18 = vrot.slane %v570_v14, 2  ;;  %v687_v0 = vshll.u32 %v686_v2, 16 }
 0x43b   : > { %v1311_v8 = vadd.f32 %v730_v59, %v729_v20  ;;  %v572_v26 = vadd.f32 %v571_v18, %v570_v14  ;;  %v701_v59 = vcvt.f32.s32 %v2099_v52 }
 0x43d   : > { %v1312_v62 = vrot.slane %v1311_v8, 4 }
 0x43f   : > { %v1313_v29 = vadd.f32 %v1312_v62, %v1311_v8  ;;  %v1359_v8 = vshll.u32 %v1358_v35, 16 }
 0x441   : > { %v1314_v11 = vrot.slane %v1313_v29, 2 }
 0x443   : > { %v1315_v21 = vadd.f32 %v1314_v11, %v1313_v29  ;;  %v702_v29 = vshll.u32 %v701_v59, 16 }
 0x445   : > { %v1316_v39 = vrot.slane %v1315_v21, 1 }
 0x447   : > { %v1317_v3 = vadd.f32 %v1316_v39, %v1315_v21 }
 0x449   : > { %v1318_v50 = vmul.f32 16.0, %v1317_v3 }
 0x484   : > { %v648_v17 = vpop.xlane.xlu0 %647 }
 0x485   : > { %v652_v61 = vadd.f32 %v648_v17, %v1854_v55  ;;  %v573_v55 = vrot.slane %v572_v26, 1 }
 0x487   : > { %v574_v46 = vadd.f32 %v573_v55, %v572_v26 }
 0x488   : > { %v651_v22 = vpop.xlane.xlu1 %650  ;;  %v1307_v13 = vpop.xlane.xlu0 %1306 }
 0x489   : > { %v653_v37 = vadd.f32 %v651_v22, %v1856_v56  ;;  %v1394_v1 = vsel %vm1384_vm14, %v574_v46, 0.0 }
 0x48b   : > { %v654_v28 = vadd.f32 %v653_v37, %v652_v61 }
 0x48c   : > { %v1310_v44 = vpop.xlane.xlu1 %1309  ;;  %v684_v63 = vpop.xlane.xlu0 %683 }
 0x48d   : > { %v655_v7 = vrot.slane %v654_v28, 4  ;;  %v1319_v24 = vadd.f32 %v1310_v44, %v1307_v13  ;;  %v685_v32 = vcvt.f32.s32 %v684_v63 }
 0x48f   : > { %v656_v33 = vadd.f32 %v655_v7, %v654_v28  ;;  %v1320_v30 = vrot.slane %v1319_v24, 4  ;;  %v688_v62 = vadd.s32 %v687_v0, %v685_v32 }
 0x490   : > { %v699_v16 = vpop.xlane.xlu0 %698 }
 0x491   : > { %v657_v4 = vrot.slane %v656_v33, 2  ;;  %v1321_v58 = vadd.f32 %v1320_v30, %v1319_v24  ;;  %v700_v34 = vcvt.f32.s32 %v699_v16  ;;  %v1385_v60 = vsel %vm1384_vm14, %v688_v62, 0 }
 0x493   : > { %v658_v56 = vadd.f32 %v657_v4, %v656_v33  ;;  %v1322_v38 = vrot.slane %v1321_v58, 2  ;;  %v703_v47 = vadd.s32 %v702_v29, %v700_v34 }
 0x495   : > { %v659_v43 = vrot.slane %v658_v56, 1  ;;  %v1323_v27 = vadd.f32 %v1322_v38, %v1321_v58  ;;  %v1386_v61 = vsel %vm1384_vm14, %v703_v47, 0 }
 0x497   : > { %v660_v48 = vadd.f32 %v659_v43, %v658_v56  ;;  %v1324_v49 = vrot.slane %v1323_v27, 1 }
 0x499   : > { %v1325_v51 = vadd.f32 %v1324_v49, %v1323_v27  ;;  %v1395_v6 = vsel %vm1387_vm13, %v660_v48, 0.0 }
 0x49a   : > { %v1396_v36 = vadd.f32 %v1395_v6, %v1394_v1 }
 0x49b   : > { %v1326_v41 = vsub.f32 %v1318_v50, %v1325_v51 }
 0x49d   : > { %v1398_v19 = vsel %vm1397_vm15, %v1326_v41, 0.0 }
 0x49e   : > { %v1399_v31 = vadd.f32 %v1398_v19, %v1396_v36 }
 0x4a0   : > { %v1402_v10 = vadd.f32 %v1401_v54, %v1399_v31 }
 0x4a2   : > { %v1404_v5 = vsel %vm1403_vm2, %v1402_v10, 0.0 }
 0x4a3   : > { %1405 = vst [vmem:[%s341_s20] sm:$0xff] %v1404_v5 }
 0x4b6   : > { %v1356_v20 = vpop.xlane.xlu1 %1355 }
 0x4b7   : > { %v1357_v57 = vcvt.f32.s32 %v1356_v20 }
 0x4b9   : > { %v1360_v17 = vadd.s32 %v1359_v8, %v1357_v57 }
 0x4ba   : > { %v1371_v14 = vpop.xlane.xlu1 %1370 }
 0x4bb   : > { %v1388_v52 = vsel %vm1387_vm13, %v1360_v17, 0  ;;  %v1372_v40 = vcvt.f32.s32 %v1371_v14 }
 0x4bc   : > { %v1390_v22 = vadd.s32 %v1388_v52, %v1385_v60 }
 0x4bd   : > { %v1375_v11 = vadd.s32 %v1374_v9, %v1372_v40 }
 0x4be   : > { %1392 = vst [vmem:[%s336_s22] sm:$0xff] %v1390_v22 }
 0x4bf   : > { %v1389_v37 = vsel %vm1387_vm13, %v1375_v11, 0 }
 0x4c0   : > { %v1391_v53 = vadd.s32 %v1389_v37, %v1386_v61 }
 0x4c2   : > { %1393 = vst [vmem:[%s336_s22 + $0x8] sm:$0xff] %v1391_v53 }
 0x4c3 PF: > { %s19_s27 = sadd.s32 1, %s1626_s27  }
 0x4c4   : > { %p16_p5 = scmp.ge.s32.totalorder %s19_s27, 4  }
 0x4c6   :  { %18 = sbr.rel (!%p16_p5) target bundleno = 1 (0x1), region = 93 }

</bundles_post_ra>
